<compile_context>
chip_gen: v5e
topology: v5e:2x2
jax: 0.10.0
libtpu: 0.0.40
codegen_flags: <defaults>
</compile_context>

<pallas_src>
import jax
import jax.numpy as jnp
from jax import lax
from jax.experimental import pallas as pl
from jax.experimental.pallas import tpu as pltpu

IN_DIM = 128      # Embedding(embedding_dim=128) feeds Linear(in_dim, in_dim)
HIDDEN = 32       # bottleneck hidden_dim
SEQ = 128         # tokens per batch element (out.view(batch_size*128, -1))
NUM_EMB = 128     # Embedding(num_embeddings=128, ...)
NUM_LAYERS = 8    # 4 encoder + 4 decoder Linear+ReLU layers (layer 0 fused with emb)
TM_CAP = 2048     # row-tile ceiling (keeps the (TM,1) token tile + activations small)


def ae_kernel(tok_ref, w_ref, b_ref, out_ref):
    """tok_ref: (TM, 1) int32 token ids.
    w_ref:   (8, 128, 128) bf16 packed weights; w_ref[0] is EW1 = emb @ W1.
    b_ref:   (8, 1, 128)  f32  packed biases (bottleneck bias zero-padded).
    out_ref: (TM, 128)    f32  softmax probabilities.
    """
    # --- embedding lookup as one-hot (layer 0's matmul uses the fused EW1) ---
    tok = tok_ref[...]                                              # (TM, 1) int32
    col = lax.broadcasted_iota(jnp.int32, (tok.shape[0], NUM_EMB), 1)
    h = (tok == col).astype(jnp.bfloat16)                           # (TM, 128) one-hot
    # NOTE: out-of-range token ids silently map to a zero row (nn.Embedding
    # would raise); inputs are assumed to lie in [0, 128).

    # --- 8 fused Linear + bias + ReLU layers, all 128x128 on the MXU ---
    for li in range(NUM_LAYERS):
        y = jnp.dot(h.astype(jnp.bfloat16), w_ref[li],
                    preferred_element_type=jnp.float32)             # (TM, 128) f32
        h = jnp.maximum(y + b_ref[li], 0.0)

    # --- row-wise softmax over the feature axis ---
    m = jnp.max(h, axis=-1, keepdims=True)
    e = jnp.exp(h - m)
    s = jnp.sum(e, axis=-1, keepdims=True)
    out_ref[...] = e * pl.reciprocal(s, approx=True)


def _choose_tile(rows, cap=TM_CAP):
    """rows is always a multiple of 128.  Pick TM that divides rows (no padding,
    no post-kernel trim).  rows <= cap -> single grid step (best on 1-TC chips).
    Otherwise prefer the largest divisor <= cap that gives an EVEN step count
    so the parallel row axis balances across v7x's two TensorCores."""
    if rows <= cap:
        return rows
    best = None        # largest divisor <= cap
    best_even = None   # largest divisor <= cap with an even step count
    tm = cap - (cap % 128)
    while tm >= 128:
        if rows % tm == 0:
            if best is None:
                best = tm
            if best_even is None and (rows // tm) % 2 == 0:
                best_even = tm
            if best is not None and best_even is not None:
                break
        tm -= 128
    if best_even is not None and best_even * 2 >= best:
        return best_even
    return best if best is not None else 128


def _prep_packed_params(emb_table, weights_io, biases):
    """Pad the 32-wide bottleneck to 128, cast weights to bf16, fold the
    embedding table into layer 1, and pack weights/biases into single arrays."""
    ws, bs = [], []
    for w, b in zip(weights_io, biases):
        fin, fout = w.shape
        if fin < IN_DIM or fout < IN_DIM:
            w = jnp.zeros((IN_DIM, IN_DIM), w.dtype).at[:fin, :fout].set(w)
            b = jnp.zeros((IN_DIM,), b.dtype).at[:fout].set(b)
        ws.append(w.astype(jnp.bfloat16))
        bs.append(b.astype(jnp.float32))

    # Fold: EW1 = emb_bf16 @ W1_bf16 (f32 accumulate), cast back to bf16.
    emb_bf16 = emb_table.astype(jnp.bfloat16)
    ew1 = jnp.dot(emb_bf16, ws[0],
                  preferred_element_type=jnp.float32).astype(jnp.bfloat16)
    ws[0] = ew1

    w_packed = jnp.stack(ws, axis=0)                                   # (8,128,128) bf16
    b_packed = jnp.stack(bs, axis=0).reshape(NUM_LAYERS, 1, IN_DIM)    # (8,1,128) f32
    return w_packed, b_packed


def ae_forward(tokens, emb_table, weights_io, biases):
    """tokens: (B, SEQ) int32; weights_io: list of (in, out); biases: list of (out,)."""
    batch = tokens.shape[0]
    rows = batch * SEQ
    tm = _choose_tile(rows)
    assert rows % tm == 0

    tok2 = tokens.reshape(rows, 1).astype(jnp.int32)
    w_packed, b_packed = _prep_packed_params(emb_table, weights_io, biases)

    out = pl.pallas_call(
        ae_kernel,
        out_shape=jax.ShapeDtypeStruct((rows, IN_DIM), jnp.float32),
        grid_spec=pltpu.PrefetchScalarGridSpec(
            num_scalar_prefetch=0,
            grid=(rows // tm,),
            in_specs=[
                pl.BlockSpec((tm, 1), lambda i: (i, 0)),
                pl.BlockSpec((NUM_LAYERS, IN_DIM, IN_DIM), lambda i: (0, 0, 0)),
                pl.BlockSpec((NUM_LAYERS, 1, IN_DIM), lambda i: (0, 0, 0)),
            ],
            out_specs=pl.BlockSpec((tm, IN_DIM), lambda i: (i, 0)),
        ),
        compiler_params=pltpu.CompilerParams(
            dimension_semantics=("parallel",),
            vmem_limit_bytes=48 * 1024 * 1024,
        ),
    )(tok2, w_packed, b_packed)
    return out


# ------------------------- deterministic parameter init -------------------------

def xavier_uniform(key, out_f, in_f):
    a = (6.0 / (in_f + out_f)) ** 0.5
    return jax.random.uniform(key, (out_f, in_f), jnp.float32, -a, a)


def torch_bias_init(key, out_f, in_f):
    bound = 1.0 / (in_f ** 0.5)
    return jax.random.uniform(key, (out_f,), jnp.float32, -bound, bound)


def make_params(key):
    # (in, out) per Linear, in PyTorch module order
    dims = [(IN_DIM, IN_DIM), (IN_DIM, IN_DIM), (IN_DIM, IN_DIM), (IN_DIM, HIDDEN),
            (HIDDEN, IN_DIM), (IN_DIM, IN_DIM), (IN_DIM, IN_DIM), (IN_DIM, IN_DIM)]
    keys = jax.random.split(key, 1 + 2 * len(dims))
    emb_table = jax.random.normal(keys[0], (NUM_EMB, IN_DIM), jnp.float32)  # Embedding N(0,1)
    weights_io, biases = [], []
    for li, (fin, fout) in enumerate(dims):
        w = xavier_uniform(keys[1 + 2 * li], fout, fin)          # (out, in) like torch
        b = torch_bias_init(keys[2 + 2 * li], fout, fin)
        weights_io.append(jnp.asarray(w.T))                      # pre-transpose -> (in, out)
        biases.append(b)
    return emb_table, weights_io, biases


def ref_forward(tokens, emb_table, weights_io, biases):
    """Pure-JAX (unfused) reference emulating the kernel's bf16 matmul precision."""
    h = emb_table.astype(jnp.bfloat16)[tokens.reshape(-1)].astype(jnp.float32)
    for w, b in zip(weights_io, biases):
        y = jnp.dot(h.astype(jnp.bfloat16), w.astype(jnp.bfloat16),
                    preferred_element_type=jnp.float32)
        h = jnp.maximum(y + b, 0.0)
    return jax.nn.softmax(h, axis=-1)


if __name__ == "__main__":
    key = jax.random.PRNGKey(0)
    k_tok, k_par = jax.random.split(key)

    batch_size = 2
    tokens = jax.random.randint(k_tok, (batch_size, SEQ), 0, NUM_EMB, dtype=jnp.int32)

    emb_table, weights_io, biases = make_params(k_par)

    out = ae_forward(tokens, emb_table, weights_io, biases)
    out = jax.block_until_ready(out)

    ref = ref_forward(tokens, emb_table, weights_io, biases)
    assert out.shape == (batch_size * SEQ, IN_DIM)
    # The EW1 fold adds one extra bf16 rounding to layer-1 pre-activations; the
    # post-softmax error stays well inside 2e-3 at these (near-uniform) probs.
    assert jnp.allclose(out, ref, atol=2e-3, rtol=2e-3), "mismatch vs pure-JAX reference"

    print("KERNEL_OK")
</pallas_src>

<mosaic_0001>
module attributes {stable_mosaic.version = 11 : i64} {
  func.func @ae_kernel(%arg0: i32, %arg1: memref<256x1xi32, #tpu.memory_space<vmem>>, %arg2: memref<8x128x128xbf16, #tpu.memory_space<vmem>>, %arg3: memref<8x1x128xf32, #tpu.memory_space<vmem>>, %arg4: memref<256x128xf32, #tpu.memory_space<vmem>>) attributes {dimension_semantics = [#tpu.dimension_semantics<parallel>], iteration_bounds = array<i64: 1>, scalar_prefetch = 0 : i64, scratch_operands = 0 : i64, tpu.core_type = #tpu.core_type<tc>, window_params = [{transform_indices = @transform_0, window_bounds = array<i64: 256, 1>}, {pipeline_mode = #tpu.pipeline_mode<synchronous>, transform_indices = @transform_1, window_bounds = array<i64: 8, 128, 128>}, {pipeline_mode = #tpu.pipeline_mode<synchronous>, transform_indices = @transform_2, window_bounds = array<i64: 8, 1, 128>}, {transform_indices = @transform_3, window_bounds = array<i64: 256, 128>}]} {
    %c0 = arith.constant 0 : index
    %c0_0 = arith.constant 0 : index
    %0 = vector.load %arg1[%c0, %c0_0] : memref<256x1xi32, #tpu.memory_space<vmem>>, vector<256x1xi32>
    %1 = tpu.iota {dimensions = array<i32: 1>} : vector<256x128xi32>
    %2 = vector.broadcast %0 : vector<256x1xi32> to vector<256x128xi32>
    %3 = arith.cmpi eq, %2, %1 : vector<256x128xi32>
    %4 = arith.extui %3 : vector<256x128xi1> to vector<256x128xi32>
    %5 = arith.sitofp %4 : vector<256x128xi32> to vector<256x128xf32>
    %6 = arith.truncf %5 : vector<256x128xf32> to vector<256x128xbf16>
    %c0_1 = arith.constant 0 : index
    %c0_2 = arith.constant 0 : index
    %c0_3 = arith.constant 0 : index
    %7 = vector.load %arg2[%c0_1, %c0_2, %c0_3] : memref<8x128x128xbf16, #tpu.memory_space<vmem>>, vector<1x128x128xbf16>
    %8 = vector.shape_cast %7 : vector<1x128x128xbf16> to vector<128x128xbf16>
    %cst = arith.constant dense<0.000000e+00> : vector<256x128xf32>
    %9 = tpu.matmul %6, %8, %cst {dimension_numbers = #tpu.dot_dimension_numbers<[1], [0], [0], [1], [0, 0, 1, 1], [], []>} : vector<256x128xbf16>, vector<128x128xbf16>, vector<256x128xf32> -> vector<256x128xf32>
    %c0_4 = arith.constant 0 : index
    %c0_5 = arith.constant 0 : index
    %c0_6 = arith.constant 0 : index
    %10 = vector.load %arg3[%c0_4, %c0_5, %c0_6] : memref<8x1x128xf32, #tpu.memory_space<vmem>>, vector<1x1x128xf32>
    %11 = vector.shape_cast %10 : vector<1x1x128xf32> to vector<1x128xf32>
    %12 = vector.broadcast %11 : vector<1x128xf32> to vector<256x128xf32>
    %13 = arith.addf %9, %12 : vector<256x128xf32>
    %cst_7 = arith.constant 0.000000e+00 : f32
    %14 = vector.broadcast %cst_7 : f32 to vector<256x128xf32>
    %15 = arith.maximumf %13, %14 : vector<256x128xf32>
    %16 = arith.truncf %15 : vector<256x128xf32> to vector<256x128xbf16>
    %c1 = arith.constant 1 : index
    %c0_8 = arith.constant 0 : index
    %c0_9 = arith.constant 0 : index
    %17 = vector.load %arg2[%c1, %c0_8, %c0_9] : memref<8x128x128xbf16, #tpu.memory_space<vmem>>, vector<1x128x128xbf16>
    %18 = vector.shape_cast %17 : vector<1x128x128xbf16> to vector<128x128xbf16>
    %cst_10 = arith.constant dense<0.000000e+00> : vector<256x128xf32>
    %19 = tpu.matmul %16, %18, %cst_10 {dimension_numbers = #tpu.dot_dimension_numbers<[1], [0], [0], [1], [0, 0, 1, 1], [], []>} : vector<256x128xbf16>, vector<128x128xbf16>, vector<256x128xf32> -> vector<256x128xf32>
    %c1_11 = arith.constant 1 : index
    %c0_12 = arith.constant 0 : index
    %c0_13 = arith.constant 0 : index
    %20 = vector.load %arg3[%c1_11, %c0_12, %c0_13] : memref<8x1x128xf32, #tpu.memory_space<vmem>>, vector<1x1x128xf32>
    %21 = vector.shape_cast %20 : vector<1x1x128xf32> to vector<1x128xf32>
    %22 = vector.broadcast %21 : vector<1x128xf32> to vector<256x128xf32>
    %23 = arith.addf %19, %22 : vector<256x128xf32>
    %cst_14 = arith.constant 0.000000e+00 : f32
    %24 = vector.broadcast %cst_14 : f32 to vector<256x128xf32>
    %25 = arith.maximumf %23, %24 : vector<256x128xf32>
    %26 = arith.truncf %25 : vector<256x128xf32> to vector<256x128xbf16>
    %c2 = arith.constant 2 : index
    %c0_15 = arith.constant 0 : index
    %c0_16 = arith.constant 0 : index
    %27 = vector.load %arg2[%c2, %c0_15, %c0_16] : memref<8x128x128xbf16, #tpu.memory_space<vmem>>, vector<1x128x128xbf16>
    %28 = vector.shape_cast %27 : vector<1x128x128xbf16> to vector<128x128xbf16>
    %cst_17 = arith.constant dense<0.000000e+00> : vector<256x128xf32>
    %29 = tpu.matmul %26, %28, %cst_17 {dimension_numbers = #tpu.dot_dimension_numbers<[1], [0], [0], [1], [0, 0, 1, 1], [], []>} : vector<256x128xbf16>, vector<128x128xbf16>, vector<256x128xf32> -> vector<256x128xf32>
    %c2_18 = arith.constant 2 : index
    %c0_19 = arith.constant 0 : index
    %c0_20 = arith.constant 0 : index
    %30 = vector.load %arg3[%c2_18, %c0_19, %c0_20] : memref<8x1x128xf32, #tpu.memory_space<vmem>>, vector<1x1x128xf32>
    %31 = vector.shape_cast %30 : vector<1x1x128xf32> to vector<1x128xf32>
    %32 = vector.broadcast %31 : vector<1x128xf32> to vector<256x128xf32>
    %33 = arith.addf %29, %32 : vector<256x128xf32>
    %cst_21 = arith.constant 0.000000e+00 : f32
    %34 = vector.broadcast %cst_21 : f32 to vector<256x128xf32>
    %35 = arith.maximumf %33, %34 : vector<256x128xf32>
    %36 = arith.truncf %35 : vector<256x128xf32> to vector<256x128xbf16>
    %c3 = arith.constant 3 : index
    %c0_22 = arith.constant 0 : index
    %c0_23 = arith.constant 0 : index
    %37 = vector.load %arg2[%c3, %c0_22, %c0_23] : memref<8x128x128xbf16, #tpu.memory_space<vmem>>, vector<1x128x128xbf16>
    %38 = vector.shape_cast %37 : vector<1x128x128xbf16> to vector<128x128xbf16>
    %cst_24 = arith.constant dense<0.000000e+00> : vector<256x128xf32>
    %39 = tpu.matmul %36, %38, %cst_24 {dimension_numbers = #tpu.dot_dimension_numbers<[1], [0], [0], [1], [0, 0, 1, 1], [], []>} : vector<256x128xbf16>, vector<128x128xbf16>, vector<256x128xf32> -> vector<256x128xf32>
    %c3_25 = arith.constant 3 : index
    %c0_26 = arith.constant 0 : index
    %c0_27 = arith.constant 0 : index
    %40 = vector.load %arg3[%c3_25, %c0_26, %c0_27] : memref<8x1x128xf32, #tpu.memory_space<vmem>>, vector<1x1x128xf32>
    %41 = vector.shape_cast %40 : vector<1x1x128xf32> to vector<1x128xf32>
    %42 = vector.broadcast %41 : vector<1x128xf32> to vector<256x128xf32>
    %43 = arith.addf %39, %42 : vector<256x128xf32>
    %cst_28 = arith.constant 0.000000e+00 : f32
    %44 = vector.broadcast %cst_28 : f32 to vector<256x128xf32>
    %45 = arith.maximumf %43, %44 : vector<256x128xf32>
    %46 = arith.truncf %45 : vector<256x128xf32> to vector<256x128xbf16>
    %c4 = arith.constant 4 : index
    %c0_29 = arith.constant 0 : index
    %c0_30 = arith.constant 0 : index
    %47 = vector.load %arg2[%c4, %c0_29, %c0_30] : memref<8x128x128xbf16, #tpu.memory_space<vmem>>, vector<1x128x128xbf16>
    %48 = vector.shape_cast %47 : vector<1x128x128xbf16> to vector<128x128xbf16>
    %cst_31 = arith.constant dense<0.000000e+00> : vector<256x128xf32>
    %49 = tpu.matmul %46, %48, %cst_31 {dimension_numbers = #tpu.dot_dimension_numbers<[1], [0], [0], [1], [0, 0, 1, 1], [], []>} : vector<256x128xbf16>, vector<128x128xbf16>, vector<256x128xf32> -> vector<256x128xf32>
    %c4_32 = arith.constant 4 : index
    %c0_33 = arith.constant 0 : index
    %c0_34 = arith.constant 0 : index
    %50 = vector.load %arg3[%c4_32, %c0_33, %c0_34] : memref<8x1x128xf32, #tpu.memory_space<vmem>>, vector<1x1x128xf32>
    %51 = vector.shape_cast %50 : vector<1x1x128xf32> to vector<1x128xf32>
    %52 = vector.broadcast %51 : vector<1x128xf32> to vector<256x128xf32>
    %53 = arith.addf %49, %52 : vector<256x128xf32>
    %cst_35 = arith.constant 0.000000e+00 : f32
    %54 = vector.broadcast %cst_35 : f32 to vector<256x128xf32>
    %55 = arith.maximumf %53, %54 : vector<256x128xf32>
    %56 = arith.truncf %55 : vector<256x128xf32> to vector<256x128xbf16>
    %c5 = arith.constant 5 : index
    %c0_36 = arith.constant 0 : index
    %c0_37 = arith.constant 0 : index
    %57 = vector.load %arg2[%c5, %c0_36, %c0_37] : memref<8x128x128xbf16, #tpu.memory_space<vmem>>, vector<1x128x128xbf16>
    %58 = vector.shape_cast %57 : vector<1x128x128xbf16> to vector<128x128xbf16>
    %cst_38 = arith.constant dense<0.000000e+00> : vector<256x128xf32>
    %59 = tpu.matmul %56, %58, %cst_38 {dimension_numbers = #tpu.dot_dimension_numbers<[1], [0], [0], [1], [0, 0, 1, 1], [], []>} : vector<256x128xbf16>, vector<128x128xbf16>, vector<256x128xf32> -> vector<256x128xf32>
    %c5_39 = arith.constant 5 : index
    %c0_40 = arith.constant 0 : index
    %c0_41 = arith.constant 0 : index
    %60 = vector.load %arg3[%c5_39, %c0_40, %c0_41] : memref<8x1x128xf32, #tpu.memory_space<vmem>>, vector<1x1x128xf32>
    %61 = vector.shape_cast %60 : vector<1x1x128xf32> to vector<1x128xf32>
    %62 = vector.broadcast %61 : vector<1x128xf32> to vector<256x128xf32>
    %63 = arith.addf %59, %62 : vector<256x128xf32>
    %cst_42 = arith.constant 0.000000e+00 : f32
    %64 = vector.broadcast %cst_42 : f32 to vector<256x128xf32>
    %65 = arith.maximumf %63, %64 : vector<256x128xf32>
    %66 = arith.truncf %65 : vector<256x128xf32> to vector<256x128xbf16>
    %c6 = arith.constant 6 : index
    %c0_43 = arith.constant 0 : index
    %c0_44 = arith.constant 0 : index
    %67 = vector.load %arg2[%c6, %c0_43, %c0_44] : memref<8x128x128xbf16, #tpu.memory_space<vmem>>, vector<1x128x128xbf16>
    %68 = vector.shape_cast %67 : vector<1x128x128xbf16> to vector<128x128xbf16>
    %cst_45 = arith.constant dense<0.000000e+00> : vector<256x128xf32>
    %69 = tpu.matmul %66, %68, %cst_45 {dimension_numbers = #tpu.dot_dimension_numbers<[1], [0], [0], [1], [0, 0, 1, 1], [], []>} : vector<256x128xbf16>, vector<128x128xbf16>, vector<256x128xf32> -> vector<256x128xf32>
    %c6_46 = arith.constant 6 : index
    %c0_47 = arith.constant 0 : index
    %c0_48 = arith.constant 0 : index
    %70 = vector.load %arg3[%c6_46, %c0_47, %c0_48] : memref<8x1x128xf32, #tpu.memory_space<vmem>>, vector<1x1x128xf32>
    %71 = vector.shape_cast %70 : vector<1x1x128xf32> to vector<1x128xf32>
    %72 = vector.broadcast %71 : vector<1x128xf32> to vector<256x128xf32>
    %73 = arith.addf %69, %72 : vector<256x128xf32>
    %cst_49 = arith.constant 0.000000e+00 : f32
    %74 = vector.broadcast %cst_49 : f32 to vector<256x128xf32>
    %75 = arith.maximumf %73, %74 : vector<256x128xf32>
    %76 = arith.truncf %75 : vector<256x128xf32> to vector<256x128xbf16>
    %c7 = arith.constant 7 : index
    %c0_50 = arith.constant 0 : index
    %c0_51 = arith.constant 0 : index
    %77 = vector.load %arg2[%c7, %c0_50, %c0_51] : memref<8x128x128xbf16, #tpu.memory_space<vmem>>, vector<1x128x128xbf16>
    %78 = vector.shape_cast %77 : vector<1x128x128xbf16> to vector<128x128xbf16>
    %cst_52 = arith.constant dense<0.000000e+00> : vector<256x128xf32>
    %79 = tpu.matmul %76, %78, %cst_52 {dimension_numbers = #tpu.dot_dimension_numbers<[1], [0], [0], [1], [0, 0, 1, 1], [], []>} : vector<256x128xbf16>, vector<128x128xbf16>, vector<256x128xf32> -> vector<256x128xf32>
    %c7_53 = arith.constant 7 : index
    %c0_54 = arith.constant 0 : index
    %c0_55 = arith.constant 0 : index
    %80 = vector.load %arg3[%c7_53, %c0_54, %c0_55] : memref<8x1x128xf32, #tpu.memory_space<vmem>>, vector<1x1x128xf32>
    %81 = vector.shape_cast %80 : vector<1x1x128xf32> to vector<1x128xf32>
    %82 = vector.broadcast %81 : vector<1x128xf32> to vector<256x128xf32>
    %83 = arith.addf %79, %82 : vector<256x128xf32>
    %cst_56 = arith.constant 0.000000e+00 : f32
    %84 = vector.broadcast %cst_56 : f32 to vector<256x128xf32>
    %85 = arith.maximumf %83, %84 : vector<256x128xf32>
    %cst_57 = arith.constant dense<0xFF800000> : vector<256xf32>
    %86 = vector.multi_reduction <maximumf>, %85, %cst_57 [1] : vector<256x128xf32> to vector<256xf32>
    %87 = vector.shape_cast %86 : vector<256xf32> to vector<256x1xf32>
    %88 = vector.broadcast %87 : vector<256x1xf32> to vector<256x128xf32>
    %89 = arith.subf %85, %88 : vector<256x128xf32>
    %90 = math.exp %89 : vector<256x128xf32>
    %cst_58 = arith.constant dense<0.000000e+00> : vector<256xf32>
    %91 = vector.multi_reduction <add>, %90, %cst_58 [1] : vector<256x128xf32> to vector<256xf32>
    %92 = vector.shape_cast %91 : vector<256xf32> to vector<256x1xf32>
    %93 = tpu.reciprocal %92 {approx = true} : vector<256x1xf32> -> vector<256x1xf32>
    %94 = vector.broadcast %93 : vector<256x1xf32> to vector<256x128xf32>
    %95 = arith.mulf %90, %94 : vector<256x128xf32>
    %c0_59 = arith.constant 0 : index
    %c0_60 = arith.constant 0 : index
    %96 = vector.load %arg4[%c0_59, %c0_60] : memref<256x128xf32, #tpu.memory_space<vmem>>, vector<256x128xf32>
    tpu.vector_store %arg4[%c0_59, %c0_60], %95 {strides = array<i32>} : memref<256x128xf32, #tpu.memory_space<vmem>>, vector<256x128xf32>,
    return
  }
  func.func @transform_0(%arg0: i32) -> (i32, i32) {
    %c0_i32 = arith.constant 0 : i32
    %c0_i32_0 = arith.constant 0 : i32
    return %arg0, %c0_i32 : i32, i32
  }
  func.func @transform_1(%arg0: i32) -> (i32, i32, i32) {
    %c0_i32 = arith.constant 0 : i32
    %c0_i32_0 = arith.constant 0 : i32
    %c0_i32_1 = arith.constant 0 : i32
    %c0_i32_2 = arith.constant 0 : i32
    return %c0_i32, %c0_i32_0, %c0_i32_1 : i32, i32, i32
  }
  func.func @transform_2(%arg0: i32) -> (i32, i32, i32) {
    %c0_i32 = arith.constant 0 : i32
    %c0_i32_0 = arith.constant 0 : i32
    %c0_i32_1 = arith.constant 0 : i32
    %c0_i32_2 = arith.constant 0 : i32
    return %c0_i32, %c0_i32_0, %c0_i32_1 : i32, i32, i32
  }
  func.func @transform_3(%arg0: i32) -> (i32, i32) {
    %c0_i32 = arith.constant 0 : i32
    %c0_i32_0 = arith.constant 0 : i32
    return %arg0, %c0_i32 : i32, i32
  }
}

</mosaic_0001>

<bundles_post_ra>
// kernel: tpu_custom_call.1
= control target key start
LH: loop header
LB: loop body
LE: loop exit
PB: predicated region body
PF: predicated region fallthrough
CT: control target
= control target key end

     0   :  { %8 = vsyncpa [#allocation3], 0  ;;  %s3668_s0 = inlined_call_operand.vmem [shape: s32[256,1], index: 0, kind: input, shape index: {}]   ;;  %s3669_s1 = inlined_call_operand.hbm [shape: bf16[8,128,128], index: 1, kind: input, shape index: {}]   ;;  %s3670_s2 = inlined_call_operand.vmem [shape: f32[8,1,128], index: 2, kind: input, shape index: {}]   ;;  %s3671_s3 = inlined_call_operand.hbm [shape: f32[256,128], index: 3, kind: output, shape index: {}]  }
   0x1   :  { %9 = vsyncpa [#allocation4], 0  ;;  %s16_s14 = sshll.u32 %s3669_s1, 4  ;;  %s2840_s15 = smov [#allocation2]   ;;  %s17_s14 = int_to_ptr.hbm [resolvable:$true] %s16_s14 }
   0x2   :  { %s18_s16 = sshll.u32 %s2840_s15, 4  ;;  %s2841_s17 = smov 64   ;;  %s19_s16 = int_to_ptr.vmem [resolvable:$true] %s18_s16 }
   0x3   :  { %s2842_s18 = smov 4  }
   0x4   :  { %24 = dma.hbm_to_vmem [thread:$0]  %s17_s14, 8192, %s19_s16, [#allocation3], %s2841_s17, %s2841_s17, %s2842_s18  }
   0x5   :  { %2836 = dma.done.wait [#allocation3], 8192  }
   0x6   :  { %2837 = vsyncadd [#allocation3], 4294959104  ;;  %v2843_v0 = vmov 0   ;;  %v35_v1 = vld [vmem:[%s3668_s0 + $0x20] sm:$0xff]  ;;  %v33_v2 = vld [vmem:[%s3668_s0 + $0x10] sm:$0xff]  ;;  %v63_v42 = vlaneseq  ;;  %s2237_s17 = sshll.u32 %s3671_s3, 4  ;;  %s2238_s17 = int_to_ptr.hbm [resolvable:$true] %s2237_s17 }
   0x7   :  { %2651 = vset.pattern.permute.xlu2 %v2843_v0  ;;  %2650 = vset.pattern.permute.xlu1 %v2843_v0  ;;  %v31_v3 = vld [vmem:[%s3668_s0] sm:$0xff]  ;;  %v36_v4 = vld [vmem:[%s3668_s0 + $0x28] sm:$0xff]  ;;  %v34_v5 = vld [vmem:[%s3668_s0 + $0x18] sm:$0xff]  ;;  %v2844_v45 = vmov 1.0|1.0   ;;  %s2846_s18 = smov 128  }
   0x8   :  { %2649 = vset.pattern.permute.xlu0 %v2843_v0  ;;  %78 = vperm.xlu2 %2651, %v35_v1   ;;  %v32_v6 = vld [vmem:[%s3668_s0 + $0x8] sm:$0xff]  ;;  %v39_v7 = vld [vmem:[%s3668_s0 + $0x40] sm:$0xff]  ;;  %v38_v8 = vld [vmem:[%s3668_s0 + $0x38] sm:$0xff]  ;;  %v2967_v43 = vand.u32 127, %v63_v42  ;;  %s2847_s19 = smov 8  }
   0x9   :  { %72 = vperm.xlu1 %2650, %v33_v2   ;;  %66 = vperm.xlu0 %2649, %v31_v3   ;;  %v37_v9 = vld [vmem:[%s3668_s0 + $0x30] sm:$0xff]  ;;  %v42_v10 = vld [vmem:[%s3668_s0 + $0x58] sm:$0xff]  ;;  %v40_v12 = vld [vmem:[%s3668_s0 + $0x48] sm:$0xff] }
   0xa   :  { %v41_v11 = vld [vmem:[%s3668_s0 + $0x50] sm:$0xff]  ;;  %v44_v14 = vld [vmem:[%s3668_s0 + $0x68] sm:$0xff]  ;;  %v43_v15 = vld [vmem:[%s3668_s0 + $0x60] sm:$0xff] }
   0xb   :  { %v45_v13 = vld [vmem:[%s3668_s0 + $0x70] sm:$0xff]  ;;  %v48_v16 = vld [vmem:[%s3668_s0 + $0x88] sm:$0xff]  ;;  %v47_v17 = vld [vmem:[%s3668_s0 + $0x80] sm:$0xff] }
   0xc   :  { %v46_v18 = vld [vmem:[%s3668_s0 + $0x78] sm:$0xff]  ;;  %v51_v19 = vld [vmem:[%s3668_s0 + $0xa0] sm:$0xff]  ;;  %v49_v21 = vld [vmem:[%s3668_s0 + $0x90] sm:$0xff] }
   0xd   :  { %v50_v20 = vld [vmem:[%s3668_s0 + $0x98] sm:$0xff]  ;;  %v53_v23 = vld [vmem:[%s3668_s0 + $0xb0] sm:$0xff]  ;;  %v52_v24 = vld [vmem:[%s3668_s0 + $0xa8] sm:$0xff] }
   0xe   :  { %v54_v22 = vld [vmem:[%s3668_s0 + $0xb8] sm:$0xff]  ;;  %v57_v26 = vld [vmem:[%s3668_s0 + $0xd0] sm:$0xff]  ;;  %v56_v27 = vld [vmem:[%s3668_s0 + $0xc8] sm:$0xff] }
   0xf   :  { %v2584_v25 = vld [vmem:[#allocation2 + $0x38] sm:$0xff]  ;;  %v2583_v28 = vld [vmem:[#allocation2 + $0x30] sm:$0xff]  ;;  %v55_v29 = vld [vmem:[%s3668_s0 + $0xc0] sm:$0xff] }
  0x10   :  { %81 = vperm.xlu2 %2651, %v36_v4   ;;  %341 = vmatpush.bf16.msra.mxu0 %v2584_v25  ;;  %v2582_v30 = vld [vmem:[#allocation2 + $0x28] sm:$0xff]  ;;  %v59_v32 = vld [vmem:[%s3668_s0 + $0xe0] sm:$0xff]  ;;  %v58_v33 = vld [vmem:[%s3668_s0 + $0xd8] sm:$0xff] }
  0x11   :  { %75 = vperm.xlu1 %2650, %v34_v5   ;;  %69 = vperm.xlu0 %2649, %v32_v6   ;;  %v60_v31 = vld [vmem:[%s3668_s0 + $0xe8] sm:$0xff]  ;;  %v2581_v34 = vld [vmem:[#allocation2 + $0x20] sm:$0xff]  ;;  %v2580_v35 = vld [vmem:[#allocation2 + $0x18] sm:$0xff] }
  0x12   :  { %v62_v36 = vld [vmem:[%s3668_s0 + $0xf8] sm:$0xff]  ;;  %v61_v37 = vld [vmem:[%s3668_s0 + $0xf0] sm:$0xff]  ;;  %v2578_v39 = vld [vmem:[#allocation2 + $0x8] sm:$0xff] }
  0x13   :  { %v2579_v38 = vld [vmem:[#allocation2 + $0x10] sm:$0xff]  ;;  %v2577_v40 = vld [vmem:[#allocation2] sm:$0xff]  ;;  %v2592_v54 = vld [vmem:[#allocation2 + $0x78] sm:$0xff] }
  0x14   :  { %342 = vmatpush.bf16.msra.mxu0 %v2583_v28  ;;  %548 = vmatpush.bf16.msra.mxu1 %v2592_v54  ;;  %v2591_v57 = vld [vmem:[#allocation2 + $0x70] sm:$0xff]  ;;  %v2590_v58 = vld [vmem:[#allocation2 + $0x68] sm:$0xff]  ;;  %v2589_v59 = vld [vmem:[#allocation2 + $0x60] sm:$0xff] }
  0x15   :  { %v2588_v62 = vld [vmem:[#allocation2 + $0x58] sm:$0xff]  ;;  %v2587_v63 = vld [vmem:[#allocation2 + $0x50] sm:$0xff]  ;;  %v2586_v0 = vld [vmem:[#allocation2 + $0x48] sm:$0xff] }
  0x16   :  { %v2585_v1 = vld [vmem:[#allocation2 + $0x40] sm:$0xff] }
  0x18   :  { %90 = vperm.xlu2 %2651, %v39_v7   ;;  %343 = vmatpush.bf16.msra.mxu0 %v2582_v30  ;;  %v2998_v7 = vld [vmem:[%s3670_s2] ss:$0 sm:$0xff] }
  0x19   :  { %87 = vperm.xlu1 %2650, %v38_v8   ;;  %84 = vperm.xlu0 %2649, %v37_v9  }
  0x1a   :  { %549 = vmatpush.bf16.msra.mxu1 %v2591_v57 }
  0x1c   :  { %344 = vmatpush.bf16.msra.mxu0 %v2581_v34 }
  0x1e   :  { %550 = vmatpush.bf16.msra.mxu1 %v2590_v58  ;;  %v2600_v58 = vld [vmem:[#allocation2 + $0xb8] sm:$0xff] }
  0x1f   :  { %755 = vmatpush.bf16.msra.mxu2 %v2600_v58 }
  0x20   :  { %99 = vperm.xlu2 %2651, %v42_v10   ;;  %345 = vmatpush.bf16.msra.mxu0 %v2580_v35 }
  0x21   :  { %96 = vperm.xlu1 %2650, %v41_v11   ;;  %93 = vperm.xlu0 %2649, %v40_v12  }
  0x22   :  { %551 = vmatpush.bf16.msra.mxu1 %v2589_v59 }
  0x24   :  { %346 = vmatpush.bf16.msra.mxu0 %v2579_v38 }
  0x26   :  { %552 = vmatpush.bf16.msra.mxu1 %v2588_v62 }
  0x28   :  { %108 = vperm.xlu2 %2651, %v45_v13   ;;  %347 = vmatpush.bf16.msra.mxu0 %v2578_v39 }
  0x29   :  { %105 = vperm.xlu1 %2650, %v44_v14   ;;  %102 = vperm.xlu0 %2649, %v43_v15  }
  0x2a   :  { %553 = vmatpush.bf16.msra.mxu1 %v2587_v63 }
  0x2c   :  { %348 = vmatpush.bf16.msra.mxu0 %v2577_v40 }
  0x2e   :  { %554 = vmatpush.bf16.msra.mxu1 %v2586_v0  ;;  %v2599_v0 = vld [vmem:[#allocation2 + $0xb0] sm:$0xff] }
  0x2f   :  { %756 = vmatpush.bf16.msra.mxu2 %v2599_v0 }
  0x30   :  { %117 = vperm.xlu2 %2651, %v48_v16  }
  0x31   :  { %114 = vperm.xlu1 %2650, %v47_v17   ;;  %111 = vperm.xlu0 %2649, %v46_v18  }
  0x32   :  { %555 = vmatpush.bf16.msra.mxu1 %v2585_v1 }
  0x38   :  { %126 = vperm.xlu2 %2651, %v51_v19  }
  0x39   :  { %123 = vperm.xlu1 %2650, %v50_v20   ;;  %120 = vperm.xlu0 %2649, %v49_v21  }
  0x40   :  { %135 = vperm.xlu2 %2651, %v54_v22  }
  0x41   :  { %132 = vperm.xlu1 %2650, %v53_v23   ;;  %129 = vperm.xlu0 %2649, %v52_v24  }
  0x48   :  { %144 = vperm.xlu2 %2651, %v57_v26  }
  0x49   :  { %141 = vperm.xlu1 %2650, %v56_v27   ;;  %138 = vperm.xlu0 %2649, %v55_v29  }
  0x50   :  { %153 = vperm.xlu2 %2651, %v60_v31  }
  0x51   :  { %150 = vperm.xlu1 %2650, %v59_v32   ;;  %147 = vperm.xlu0 %2649, %v58_v33  }
  0x59   :  { %159 = vperm.xlu1 %2650, %v62_v36   ;;  %156 = vperm.xlu0 %2649, %v61_v37  }
  0x62   :  { %v79_v48 = vpop.permute.xlu2 %78 }
  0x63   :  { %vm165_vm6 = vcmp.eq.s32.totalorder %v79_v48, %v2967_v43 }
  0x6a   :  { %v82_v49 = vpop.permute.xlu2 %81 }
  0x6b   :  { %vm166_vm7 = vcmp.eq.s32.totalorder %v82_v49, %v2967_v43 }
  0x6c   :  { %vm2318_vm8 = vmpackc.low %vm166_vm7, %vm165_vm6 }
  0x72   :  { %v91_v53 = vpop.permute.xlu2 %90 }
  0x73   :  { %vm169_vm12 = vcmp.eq.s32.totalorder %v91_v53, %v2967_v43 }
  0x7a   :  { %v100_v56 = vpop.permute.xlu2 %99 }
  0x7b   :  { %v67_v41 = vpop.permute.xlu0 %66  ;;  %v73_v46 = vpop.permute.xlu1 %72  ;;  %vm172_vm15 = vcmp.eq.s32.totalorder %v100_v56, %v2967_v43 }
  0x7c   :  { %vm161_vm0 = vcmp.eq.s32.totalorder %v67_v41, %v2967_v43  ;;  %vm163_vm3 = vcmp.eq.s32.totalorder %v73_v46, %v2967_v43 }
  0x82   :  { %v109_v3 = vpop.permute.xlu2 %108 }
  0x83   :  { %v70_v44 = vpop.permute.xlu0 %69  ;;  %v76_v47 = vpop.permute.xlu1 %75  ;;  %vm175_vm6 = vcmp.eq.s32.totalorder %v109_v3, %v2967_v43  ;;  %v2597_v3 = vld [vmem:[#allocation2 + $0xa0] sm:$0xff] }
  0x84   :  { %vm162_vm1 = vcmp.eq.s32.totalorder %v70_v44, %v2967_v43  ;;  %vm164_vm4 = vcmp.eq.s32.totalorder %v76_v47, %v2967_v43 }
  0x85   :  { %vm2314_vm2 = vmpackc.low %vm162_vm1, %vm161_vm0 }
  0x86   :  { %2315 = vmatmul.msk.bf16.vlgmr.msra.gmra.mxu0 %vm2314_vm2, %v2844_v45  ;;  %vm2316_vm5 = vmpackc.low %vm164_vm4, %vm163_vm3 }
  0x8a   :  { %v118_v5 = vpop.permute.xlu2 %117 }
  0x8b   :  { %v88_v50 = vpop.permute.xlu1 %87  ;;  %v85_v51 = vpop.permute.xlu0 %84 }
  0x8c   :  { %vm168_vm9 = vcmp.eq.s32.totalorder %v88_v50, %v2967_v43  ;;  %vm167_vm10 = vcmp.eq.s32.totalorder %v85_v51, %v2967_v43 }
  0x8d   :  { %vm2320_vm11 = vmpackc.low %vm168_vm9, %vm167_vm10  ;;  %vm178_vm9 = vcmp.eq.s32.totalorder %v118_v5, %v2967_v43 }
  0x92   :  { %v127_v24 = vpop.permute.xlu2 %126 }
  0x93   :  { %v94_v52 = vpop.permute.xlu0 %93  ;;  %v97_v55 = vpop.permute.xlu1 %96 }
  0x94   :  { %vm170_vm13 = vcmp.eq.s32.totalorder %v94_v52, %v2967_v43  ;;  %vm171_vm0 = vcmp.eq.s32.totalorder %v97_v55, %v2967_v43 }
  0x95   :  { %vm2322_vm14 = vmpackc.low %vm170_vm13, %vm169_vm12 }
  0x96   :  { %2317 = vmatmul.msk.bf16.gmra.mxu0 %vm2316_vm5, %v2844_v45  ;;  %vm2324_vm1 = vmpackc.low %vm172_vm15, %vm171_vm0  ;;  %vm181_vm15 = vcmp.eq.s32.totalorder %v127_v24, %v2967_v43 }
  0x9a   :  { %v136_v33 = vpop.permute.xlu2 %135 }
  0x9b   :  { %v106_v60 = vpop.permute.xlu1 %105  ;;  %v103_v61 = vpop.permute.xlu0 %102 }
  0x9c   :  { %vm174_vm2 = vcmp.eq.s32.totalorder %v106_v60, %v2967_v43  ;;  %vm173_vm3 = vcmp.eq.s32.totalorder %v103_v61, %v2967_v43 }
  0x9d   :  { %vm2326_vm4 = vmpackc.low %vm174_vm2, %vm173_vm3  ;;  %vm184_vm2 = vcmp.eq.s32.totalorder %v136_v33, %v2967_v43 }
  0xa2   :  { %v145_v53 = vpop.permute.xlu2 %144 }
  0xa3   :  { %v112_v2 = vpop.permute.xlu0 %111  ;;  %v115_v4 = vpop.permute.xlu1 %114 }
  0xa4   :  { %vm176_vm5 = vcmp.eq.s32.totalorder %v112_v2, %v2967_v43  ;;  %v2598_v2 = vld [vmem:[#allocation2 + $0xa8] sm:$0xff] }
  0xa5   :  { %vm2328_vm7 = vmpackc.low %vm176_vm5, %vm175_vm6  ;;  %757 = vmatpush.bf16.msra.mxu2 %v2598_v2 }
  0xa6   :  { %2319 = vmatmul.msk.bf16.gmra.mxu0 %vm2318_vm8, %v2844_v45  ;;  %vm177_vm8 = vcmp.eq.s32.totalorder %v115_v4, %v2967_v43 }
  0xa7   :  { %vm2330_vm10 = vmpackc.low %vm178_vm9, %vm177_vm8  ;;  %vm187_vm8 = vcmp.eq.s32.totalorder %v145_v53, %v2967_v43 }
  0xa9   :  { %758 = vmatpush.bf16.msra.mxu2 %v2597_v3 }
  0xaa   :  { %v154_v63 = vpop.permute.xlu2 %153 }
  0xab   :  { %v124_v13 = vpop.permute.xlu1 %123  ;;  %v121_v14 = vpop.permute.xlu0 %120 }
  0xac   :  { %vm179_vm12 = vcmp.eq.s32.totalorder %v121_v14, %v2967_v43  ;;  %v2595_v14 = vld [vmem:[#allocation2 + $0x90] sm:$0xff] }
  0xb3   :  { %v130_v22 = vpop.permute.xlu0 %129  ;;  %v133_v31 = vpop.permute.xlu1 %132 }
  0xb6   :  { %2321 = vmatmul.msk.bf16.gmra.mxu0 %vm2320_vm11, %v2844_v45  ;;  %vm180_vm11 = vcmp.eq.s32.totalorder %v124_v13, %v2967_v43 }
  0xb7   :  { %vm2332_vm13 = vmpackc.low %vm180_vm11, %vm179_vm12  ;;  %vm190_vm11 = vcmp.eq.s32.totalorder %v154_v63, %v2967_v43 }
  0xbb   :  { %v142_v40 = vpop.permute.xlu1 %141  ;;  %v139_v41 = vpop.permute.xlu0 %138 }
  0xbc   :  { %vm185_vm5 = vcmp.eq.s32.totalorder %v139_v41, %v2967_v43 }
  0xc3   :  { %v148_v51 = vpop.permute.xlu0 %147  ;;  %v151_v61 = vpop.permute.xlu1 %150 }
  0xc6   :  { %2323 = vmatmul.msk.bf16.gmra.mxu0 %vm2322_vm14, %v2844_v45  ;;  %vm182_vm14 = vcmp.eq.s32.totalorder %v130_v22, %v2967_v43 }
  0xc7   :  { %vm2334_vm0 = vmpackc.low %vm182_vm14, %vm181_vm15 }
  0xd6   :  { %2325 = vmatmul.msk.bf16.gmra.mxu0 %vm2324_vm1, %v2844_v45  ;;  %vm183_vm1 = vcmp.eq.s32.totalorder %v133_v31, %v2967_v43 }
  0xd7   :  { %vm2336_vm3 = vmpackc.low %vm184_vm2, %vm183_vm1 }
  0xe6   :  { %2327 = vmatmul.msk.bf16.gmra.mxu0 %vm2326_vm4, %v2844_v45  ;;  %vm186_vm4 = vcmp.eq.s32.totalorder %v142_v40, %v2967_v43 }
  0xe7   :  { %vm2338_vm6 = vmpackc.low %vm186_vm4, %vm185_vm5 }
  0xf6   :  { %2329 = vmatmul.msk.bf16.gmra.mxu0 %vm2328_vm7, %v2844_v45  ;;  %vm188_vm7 = vcmp.eq.s32.totalorder %v148_v51, %v2967_v43 }
  0xf7   :  { %vm2340_vm9 = vmpackc.low %vm188_vm7, %vm187_vm8 }
 0x103   :  { %v350_v6 = vpop.f32.mrf.mxu0 }
 0x104   :  { %v351_v8 = vadd.f32 %v2998_v7, %v350_v6 }
 0x106   :  { %2331 = vmatmul.msk.bf16.gmra.mxu0 %vm2330_vm10, %v2844_v45  ;;  %v430_v11 = vmax.f32 %v351_v8, 0.0  ;;  %vm189_vm10 = vcmp.eq.s32.totalorder %v151_v61, %v2967_v43  ;;  %v2596_v8 = vld [vmem:[#allocation2 + $0x98] sm:$0xff] }
 0x107   :  { %vm2342_vm12 = vmpackc.low %vm190_vm11, %vm189_vm10  ;;  %759 = vmatpush.bf16.msra.mxu2 %v2596_v8 }
 0x10b   :  { %v352_v9 = vpop.f32.mrf.mxu0  ;;  %760 = vmatpush.bf16.msra.mxu2 %v2595_v14 }
 0x10c   :  { %v353_v10 = vadd.f32 %v2998_v7, %v352_v9 }
 0x10e   :  { %v431_v12 = vmax.f32 %v353_v10, 0.0 }
 0x110   :  { %v462_v15 = vpack.c.bf16 %v431_v12, %v430_v11  ;;  %v160_v11 = vpop.permute.xlu1 %159  ;;  %v157_v12 = vpop.permute.xlu0 %156 }
 0x111   :  { %vm191_vm14 = vcmp.eq.s32.totalorder %v157_v12, %v2967_v43 }
 0x112   :  { %556 = vmatmul.bf16.vlgmr.msra.gmra.mxu1 %v462_v15 }
 0x113   :  { %v355_v16 = vpop.f32.mrf.mxu0 }
 0x114   :  { %v356_v17 = vadd.f32 %v2998_v7, %v355_v16  ;;  %v2594_v16 = vld [vmem:[#allocation2 + $0x88] sm:$0xff] }
 0x115   :  { %761 = vmatpush.bf16.msra.mxu2 %v2594_v16 }
 0x116   :  { %2333 = vmatmul.msk.bf16.gmra.mxu0 %vm2332_vm13, %v2844_v45  ;;  %v432_v20 = vmax.f32 %v356_v17, 0.0  ;;  %vm192_vm13 = vcmp.eq.s32.totalorder %v160_v11, %v2967_v43  ;;  %v2593_v17 = vld [vmem:[#allocation2 + $0x80] sm:$0xff] }
 0x117   :  { %vm2344_vm15 = vmpackc.low %vm192_vm13, %vm191_vm14 }
 0x119   :  { %762 = vmatpush.bf16.msra.mxu2 %v2593_v17 }
 0x11b   :  { %v357_v18 = vpop.f32.mrf.mxu0 }
 0x11c   :  { %v358_v19 = vadd.f32 %v2998_v7, %v357_v18 }
 0x11e   :  { %v433_v21 = vmax.f32 %v358_v19, 0.0 }
 0x120   :  { %v463_v23 = vpack.c.bf16 %v433_v21, %v432_v20 }
 0x122   :  { %561 = vmatmul.bf16.gmra.mxu1 %v463_v23 }
 0x123   :  { %v360_v25 = vpop.f32.mrf.mxu0 }
 0x124   :  { %v361_v26 = vadd.f32 %v2998_v7, %v360_v25 }
 0x126   :  { %2335 = vmatmul.msk.bf16.gmra.mxu0 %vm2334_vm0, %v2844_v45  ;;  %v434_v29 = vmax.f32 %v361_v26, 0.0 }
 0x12b   :  { %v362_v27 = vpop.f32.mrf.mxu0 }
 0x12c   :  { %v363_v28 = vadd.f32 %v2998_v7, %v362_v27 }
 0x12e   :  { %v435_v30 = vmax.f32 %v363_v28, 0.0 }
 0x130   :  { %v464_v32 = vpack.c.bf16 %v435_v30, %v434_v29  ;;  %v3043_v30 = vld [vmem:[%s3670_s2 + $0x1] ss:$0 sm:$0xff] }
 0x132   :  { %566 = vmatmul.bf16.gmra.mxu1 %v464_v32 }
 0x133   :  { %v365_v34 = vpop.f32.mrf.mxu0 }
 0x134   :  { %v366_v35 = vadd.f32 %v2998_v7, %v365_v34 }
 0x136   :  { %2337 = vmatmul.msk.bf16.gmra.mxu0 %vm2336_vm3, %v2844_v45  ;;  %v436_v38 = vmax.f32 %v366_v35, 0.0 }
 0x13b   :  { %v367_v36 = vpop.f32.mrf.mxu0 }
 0x13c   :  { %v368_v37 = vadd.f32 %v2998_v7, %v367_v36 }
 0x13e   :  { %v437_v39 = vmax.f32 %v368_v37, 0.0 }
 0x140   :  { %v465_v42 = vpack.c.bf16 %v437_v39, %v436_v38 }
 0x142   :  { %571 = vmatmul.bf16.gmra.mxu1 %v465_v42 }
 0x143   :  { %v370_v44 = vpop.f32.mrf.mxu0 }
 0x144   :  { %v371_v46 = vadd.f32 %v2998_v7, %v370_v44 }
 0x146   :  { %2339 = vmatmul.msk.bf16.gmra.mxu0 %vm2338_vm6, %v2844_v45  ;;  %v438_v49 = vmax.f32 %v371_v46, 0.0 }
 0x14b   :  { %v372_v47 = vpop.f32.mrf.mxu0 }
 0x14c   :  { %v373_v48 = vadd.f32 %v2998_v7, %v372_v47  ;;  %v2616_v47 = vld [vmem:[#allocation2 + $0x138] sm:$0xff] }
 0x14d   :  { %1169 = vmatpush.bf16.msrb.mxu0 %v2616_v47 }
 0x14e   :  { %v439_v50 = vmax.f32 %v373_v48, 0.0 }
 0x150   :  { %v466_v52 = vpack.c.bf16 %v439_v50, %v438_v49 }
 0x152   :  { %576 = vmatmul.bf16.gmra.mxu1 %v466_v52 }
 0x153   :  { %v375_v54 = vpop.f32.mrf.mxu0 }
 0x154   :  { %v376_v55 = vadd.f32 %v2998_v7, %v375_v54 }
 0x156   :  { %2341 = vmatmul.msk.bf16.gmra.mxu0 %vm2340_vm9, %v2844_v45  ;;  %v440_v59 = vmax.f32 %v376_v55, 0.0 }
 0x15b   :  { %v377_v56 = vpop.f32.mrf.mxu0 }
 0x15c   :  { %v378_v57 = vadd.f32 %v2998_v7, %v377_v56 }
 0x15e   :  { %v441_v60 = vmax.f32 %v378_v57, 0.0 }
 0x160   :  { %v467_v62 = vpack.c.bf16 %v441_v60, %v440_v59 }
 0x162   :  { %581 = vmatmul.bf16.gmra.mxu1 %v467_v62 }
 0x163   :  { %v380_v1 = vpop.f32.mrf.mxu0 }
 0x164   :  { %v381_v4 = vadd.f32 %v2998_v7, %v380_v1 }
 0x166   :  { %2343 = vmatmul.msk.bf16.gmra.mxu0 %vm2342_vm12, %v2844_v45  ;;  %v442_v9 = vmax.f32 %v381_v4, 0.0 }
 0x16b   :  { %v382_v5 = vpop.f32.mrf.mxu0 }
 0x16c   :  { %v383_v6 = vadd.f32 %v2998_v7, %v382_v5 }
 0x16e   :  { %v443_v10 = vmax.f32 %v383_v6, 0.0 }
 0x170   :  { %v468_v13 = vpack.c.bf16 %v443_v10, %v442_v9 }
 0x172   :  { %586 = vmatmul.bf16.gmra.mxu1 %v468_v13  ;;  %v2615_v13 = vld [vmem:[#allocation2 + $0x130] sm:$0xff] }
 0x173   :  { %v385_v15 = vpop.f32.mrf.mxu0  ;;  %1170 = vmatpush.bf16.msrb.mxu0 %v2615_v13 }
 0x174   :  { %v386_v18 = vadd.f32 %v2998_v7, %v385_v15 }
 0x176   :  { %2345 = vmatmul.msk.bf16.gmra.mxu0 %vm2344_vm15, %v2844_v45  ;;  %v444_v21 = vmax.f32 %v386_v18, 0.0 }
 0x17b   :  { %v387_v19 = vpop.f32.mrf.mxu0 }
 0x17c   :  { %v388_v20 = vadd.f32 %v2998_v7, %v387_v19 }
 0x17e   :  { %v445_v22 = vmax.f32 %v388_v20, 0.0 }
 0x180   :  { %v469_v23 = vpack.c.bf16 %v445_v22, %v444_v21 }
 0x182   :  { %591 = vmatmul.bf16.gmra.mxu1 %v469_v23 }
 0x183   :  { %v390_v43 = vpop.f32.mrf.mxu0 }
 0x184   :  { %v391_v24 = vadd.f32 %v2998_v7, %v390_v43 }
 0x186   :  { %v446_v27 = vmax.f32 %v391_v24, 0.0 }
 0x18b   :  { %v392_v25 = vpop.f32.mrf.mxu0 }
 0x18c   :  { %v393_v26 = vadd.f32 %v2998_v7, %v392_v25 }
 0x18e   :  { %v447_v45 = vmax.f32 %v393_v26, 0.0 }
 0x18f   :  { %v557_v28 = vpop.f32.mrf.mxu1 }
 0x190   :  { %v470_v29 = vpack.c.bf16 %v447_v45, %v446_v27  ;;  %v558_v32 = vadd.f32 %v3043_v30, %v557_v28 }
 0x192   :  { %596 = vmatmul.bf16.gmra.mxu1 %v470_v29  ;;  %v637_v35 = vmax.f32 %v558_v32, 0.0 }
 0x193   :  { %v395_v31 = vpop.f32.mrf.mxu0 }
 0x194   :  { %v396_v36 = vadd.f32 %v2998_v7, %v395_v31 }
 0x196   :  { %v448_v41 = vmax.f32 %v396_v36, 0.0 }
 0x197   :  { %v559_v33 = vpop.f32.mrf.mxu1 }
 0x198   :  { %v560_v34 = vadd.f32 %v3043_v30, %v559_v33 }
 0x19a   :  { %v638_v37 = vmax.f32 %v560_v34, 0.0 }
 0x19b   :  { %v397_v38 = vpop.f32.mrf.mxu0 }
 0x19c   :  { %v398_v39 = vadd.f32 %v2998_v7, %v397_v38  ;;  %v669_v40 = vpack.c.bf16 %v638_v37, %v637_v35 }
 0x19e   :  { %v449_v42 = vmax.f32 %v398_v39, 0.0  ;;  %763 = vmatmul.bf16.vlgmr.msra.gmra.mxu2 %v669_v40 }
 0x19f   :  { %v562_v44 = vpop.f32.mrf.mxu1 }
 0x1a0   :  { %v471_v46 = vpack.c.bf16 %v449_v42, %v448_v41  ;;  %v563_v49 = vadd.f32 %v3043_v30, %v562_v44  ;;  %v2614_v41 = vld [vmem:[#allocation2 + $0x128] sm:$0xff] }
 0x1a1   :  { %1171 = vmatpush.bf16.msrb.mxu0 %v2614_v41 }
 0x1a2   :  { %601 = vmatmul.bf16.gmra.mxu1 %v471_v46  ;;  %v639_v52 = vmax.f32 %v563_v49, 0.0 }
 0x1a3   :  { %v400_v48 = vpop.f32.mrf.mxu0 }
 0x1a4   :  { %v401_v53 = vadd.f32 %v2998_v7, %v400_v48 }
 0x1a6   :  { %v450_v58 = vmax.f32 %v401_v53, 0.0 }
 0x1a7   :  { %v564_v50 = vpop.f32.mrf.mxu1 }
 0x1a8   :  { %v565_v51 = vadd.f32 %v3043_v30, %v564_v50 }
 0x1aa   :  { %v640_v54 = vmax.f32 %v565_v51, 0.0 }
 0x1ab   :  { %v402_v55 = vpop.f32.mrf.mxu0 }
 0x1ac   :  { %v403_v56 = vadd.f32 %v2998_v7, %v402_v55  ;;  %v670_v57 = vpack.c.bf16 %v640_v54, %v639_v52 }
 0x1ae   :  { %v451_v59 = vmax.f32 %v403_v56, 0.0  ;;  %768 = vmatmul.bf16.gmra.mxu2 %v670_v57  ;;  %v2608_v57 = vld [vmem:[#allocation2 + $0xf8] sm:$0xff] }
 0x1af   :  { %v567_v60 = vpop.f32.mrf.mxu1  ;;  %962 = vmatpush.bf16.msra.mxu3 %v2608_v57 }
 0x1b0   :  { %v472_v61 = vpack.c.bf16 %v451_v59, %v450_v58  ;;  %v568_v63 = vadd.f32 %v3043_v30, %v567_v60  ;;  %v2607_v59 = vld [vmem:[#allocation2 + $0xf0] sm:$0xff] }
 0x1b2   :  { %606 = vmatmul.bf16.gmra.mxu1 %v472_v61  ;;  %v641_v2 = vmax.f32 %v568_v63, 0.0  ;;  %v2606_v63 = vld [vmem:[#allocation2 + $0xe8] sm:$0xff] }
 0x1b3   :  { %v405_v62 = vpop.f32.mrf.mxu0  ;;  %963 = vmatpush.bf16.msra.mxu3 %v2607_v59 }
 0x1b4   :  { %v406_v3 = vadd.f32 %v2998_v7, %v405_v62 }
 0x1b6   :  { %v452_v9 = vmax.f32 %v406_v3, 0.0 }
 0x1b7   :  { %v569_v0 = vpop.f32.mrf.mxu1  ;;  %964 = vmatpush.bf16.msra.mxu3 %v2606_v63 }
 0x1b8   :  { %v570_v1 = vadd.f32 %v3043_v30, %v569_v0 }
 0x1ba   :  { %v642_v4 = vmax.f32 %v570_v1, 0.0 }
 0x1bb   :  { %v407_v5 = vpop.f32.mrf.mxu0 }
 0x1bc   :  { %v408_v6 = vadd.f32 %v2998_v7, %v407_v5  ;;  %v671_v8 = vpack.c.bf16 %v642_v4, %v641_v2  ;;  %v2605_v4 = vld [vmem:[#allocation2 + $0xe0] sm:$0xff] }
 0x1bd   :  { %965 = vmatpush.bf16.msra.mxu3 %v2605_v4 }
 0x1be   :  { %v453_v10 = vmax.f32 %v408_v6, 0.0  ;;  %773 = vmatmul.bf16.gmra.mxu2 %v671_v8 }
 0x1bf   :  { %v572_v11 = vpop.f32.mrf.mxu1 }
 0x1c0   :  { %v473_v12 = vpack.c.bf16 %v453_v10, %v452_v9  ;;  %v573_v15 = vadd.f32 %v3043_v30, %v572_v11 }
 0x1c2   :  { %611 = vmatmul.bf16.gmra.mxu1 %v473_v12  ;;  %v643_v18 = vmax.f32 %v573_v15, 0.0  ;;  %v2604_v12 = vld [vmem:[#allocation2 + $0xd8] sm:$0xff]  ;;  %v2613_v15 = vld [vmem:[#allocation2 + $0x120] sm:$0xff] }
 0x1c3   :  { %v410_v14 = vpop.f32.mrf.mxu0  ;;  %966 = vmatpush.bf16.msra.mxu3 %v2604_v12  ;;  %1172 = vmatpush.bf16.msrb.mxu0 %v2613_v15 }
 0x1c4   :  { %v411_v19 = vadd.f32 %v2998_v7, %v410_v14  ;;  %v2603_v14 = vld [vmem:[#allocation2 + $0xd0] sm:$0xff] }
 0x1c6   :  { %v454_v43 = vmax.f32 %v411_v19, 0.0 }
 0x1c7   :  { %v574_v16 = vpop.f32.mrf.mxu1  ;;  %967 = vmatpush.bf16.msra.mxu3 %v2603_v14  ;;  %v2623_v14 = vld [vmem:[#allocation2 + $0x170] sm:$0xff] }
 0x1c8   :  { %v575_v17 = vadd.f32 %v3043_v30, %v574_v16 }
 0x1ca   :  { %v644_v20 = vmax.f32 %v575_v17, 0.0 }
 0x1cb   :  { %v412_v21 = vpop.f32.mrf.mxu0 }
 0x1cc   :  { %v413_v22 = vadd.f32 %v2998_v7, %v412_v21  ;;  %v672_v23 = vpack.c.bf16 %v644_v20, %v643_v18  ;;  %v2602_v18 = vld [vmem:[#allocation2 + $0xc8] sm:$0xff]  ;;  %v2601_v21 = vld [vmem:[#allocation2 + $0xc0] sm:$0xff] }
 0x1cd   :  { %968 = vmatpush.bf16.msra.mxu3 %v2602_v18 }
 0x1ce   :  { %v455_v24 = vmax.f32 %v413_v22, 0.0  ;;  %778 = vmatmul.bf16.gmra.mxu2 %v672_v23 }
 0x1cf   :  { %v577_v25 = vpop.f32.mrf.mxu1 }
 0x1d0   :  { %v474_v26 = vpack.c.bf16 %v455_v24, %v454_v43  ;;  %v578_v45 = vadd.f32 %v3043_v30, %v577_v25 }
 0x1d1   :  { %969 = vmatpush.bf16.msra.mxu3 %v2601_v21 }
 0x1d2   :  { %616 = vmatmul.bf16.gmra.mxu1 %v474_v26  ;;  %v645_v31 = vmax.f32 %v578_v45, 0.0 }
 0x1d3   :  { %v415_v27 = vpop.f32.mrf.mxu0 }
 0x1d4   :  { %v416_v32 = vadd.f32 %v2998_v7, %v415_v27 }
 0x1d6   :  { %v456_v37 = vmax.f32 %v416_v32, 0.0  ;;  %v2612_v32 = vld [vmem:[#allocation2 + $0x118] sm:$0xff] }
 0x1d7   :  { %v579_v28 = vpop.f32.mrf.mxu1  ;;  %1173 = vmatpush.bf16.msrb.mxu0 %v2612_v32 }
 0x1d8   :  { %v580_v29 = vadd.f32 %v3043_v30, %v579_v28 }
 0x1da   :  { %v646_v33 = vmax.f32 %v580_v29, 0.0 }
 0x1db   :  { %v417_v34 = vpop.f32.mrf.mxu0 }
 0x1dc   :  { %v418_v35 = vadd.f32 %v2998_v7, %v417_v34  ;;  %v673_v36 = vpack.c.bf16 %v646_v33, %v645_v31  ;;  %v3080_v31 = vld [vmem:[%s3670_s2 + $0x2] ss:$0 sm:$0xff] }
 0x1de   :  { %v457_v38 = vmax.f32 %v418_v35, 0.0  ;;  %783 = vmatmul.bf16.gmra.mxu2 %v673_v36 }
 0x1df   :  { %v582_v39 = vpop.f32.mrf.mxu1 }
 0x1e0   :  { %v475_v40 = vpack.c.bf16 %v457_v38, %v456_v37  ;;  %v583_v44 = vadd.f32 %v3043_v30, %v582_v39 }
 0x1e2   :  { %621 = vmatmul.bf16.gmra.mxu1 %v475_v40  ;;  %v647_v48 = vmax.f32 %v583_v44, 0.0 }
 0x1e3   :  { %v420_v42 = vpop.f32.mrf.mxu0 }
 0x1e4   :  { %v421_v49 = vadd.f32 %v2998_v7, %v420_v42 }
 0x1e6   :  { %v458_v54 = vmax.f32 %v421_v49, 0.0 }
 0x1e7   :  { %v584_v46 = vpop.f32.mrf.mxu1 }
 0x1e8   :  { %v585_v47 = vadd.f32 %v3043_v30, %v584_v46 }
 0x1ea   :  { %v648_v50 = vmax.f32 %v585_v47, 0.0  ;;  %v2624_v47 = vld [vmem:[#allocation2 + $0x178] sm:$0xff] }
 0x1eb   :  { %v422_v51 = vpop.f32.mrf.mxu0  ;;  %1376 = vmatpush.bf16.msrb.mxu1 %v2624_v47 }
 0x1ec   :  { %v423_v52 = vadd.f32 %v2998_v7, %v422_v51  ;;  %v674_v53 = vpack.c.bf16 %v648_v50, %v647_v48 }
 0x1ee   :  { %v459_v55 = vmax.f32 %v423_v52, 0.0  ;;  %788 = vmatmul.bf16.gmra.mxu2 %v674_v53 }
 0x1ef   :  { %v587_v56 = vpop.f32.mrf.mxu1  ;;  %1377 = vmatpush.bf16.msrb.mxu1 %v2623_v14 }
 0x1f0   :  { %v476_v58 = vpack.c.bf16 %v459_v55, %v458_v54  ;;  %v588_v61 = vadd.f32 %v3043_v30, %v587_v56 }
 0x1f2   :  { %626 = vmatmul.bf16.gmra.mxu1 %v476_v58  ;;  %v649_v1 = vmax.f32 %v588_v61, 0.0 }
 0x1f3   :  { %v425_v60 = vpop.f32.mrf.mxu0 }
 0x1f4   :  { %v426_v2 = vadd.f32 %v2998_v7, %v425_v60 }
 0x1f6   :  { %v460_v9 = vmax.f32 %v426_v2, 0.0 }
 0x1f7   :  { %v589_v62 = vpop.f32.mrf.mxu1 }
 0x1f8   :  { %v590_v0 = vadd.f32 %v3043_v30, %v589_v62 }
 0x1fa   :  { %v650_v3 = vmax.f32 %v590_v0, 0.0  ;;  %v2611_v0 = vld [vmem:[#allocation2 + $0x110] sm:$0xff] }
 0x1fb   :  { %v427_v5 = vpop.f32.mrf.mxu0  ;;  %1174 = vmatpush.bf16.msrb.mxu0 %v2611_v0 }
 0x1fc   :  { %v428_v6 = vadd.f32 %v2998_v7, %v427_v5  ;;  %v675_v8 = vpack.c.bf16 %v650_v3, %v649_v1 }
 0x1fe   :  { %v461_v10 = vmax.f32 %v428_v6, 0.0  ;;  %793 = vmatmul.bf16.gmra.mxu2 %v675_v8 }
 0x1ff   :  { %v592_v11 = vpop.f32.mrf.mxu1 }
 0x200   :  { %v477_v13 = vpack.c.bf16 %v461_v10, %v460_v9  ;;  %v593_v16 = vadd.f32 %v3043_v30, %v592_v11 }
 0x202   :  { %631 = vmatmul.bf16.gmra.mxu1 %v477_v13  ;;  %v651_v19 = vmax.f32 %v593_v16, 0.0 }
 0x207   :  { %v594_v17 = vpop.f32.mrf.mxu1 }
 0x208   :  { %v595_v7 = vadd.f32 %v3043_v30, %v594_v17 }
 0x20a   :  { %v652_v20 = vmax.f32 %v595_v7, 0.0 }
 0x20c   :  { %v676_v22 = vpack.c.bf16 %v652_v20, %v651_v19 }
 0x20e   :  { %798 = vmatmul.bf16.gmra.mxu2 %v676_v22 }
 0x20f   :  { %v597_v23 = vpop.f32.mrf.mxu1 }
 0x210   :  { %v598_v43 = vadd.f32 %v3043_v30, %v597_v23 }
 0x212   :  { %v653_v26 = vmax.f32 %v598_v43, 0.0 }
 0x217   :  { %v599_v24 = vpop.f32.mrf.mxu1 }
 0x218   :  { %v600_v25 = vadd.f32 %v3043_v30, %v599_v24 }
 0x21a   :  { %v654_v27 = vmax.f32 %v600_v25, 0.0 }
 0x21c   :  { %v677_v45 = vpack.c.bf16 %v654_v27, %v653_v26 }
 0x21e   :  { %803 = vmatmul.bf16.gmra.mxu2 %v677_v45 }
 0x21f   :  { %v602_v28 = vpop.f32.mrf.mxu1 }
 0x220   :  { %v603_v33 = vadd.f32 %v3043_v30, %v602_v28  ;;  %v2610_v28 = vld [vmem:[#allocation2 + $0x108] sm:$0xff] }
 0x221   :  { %v764_v29 = vpop.f32.mrf.mxu2  ;;  %1175 = vmatpush.bf16.msrb.mxu0 %v2610_v28 }
 0x222   :  { %v765_v35 = vadd.f32 %v3080_v31, %v764_v29  ;;  %v655_v38 = vmax.f32 %v603_v33, 0.0 }
 0x224   :  { %v844_v41 = vmax.f32 %v765_v35, 0.0 }
 0x227   :  { %v604_v34 = vpop.f32.mrf.mxu1 }
 0x228   :  { %v605_v36 = vadd.f32 %v3043_v30, %v604_v34 }
 0x229   :  { %v766_v37 = vpop.f32.mrf.mxu2 }
 0x22a   :  { %v656_v39 = vmax.f32 %v605_v36, 0.0  ;;  %v767_v40 = vadd.f32 %v3080_v31, %v766_v37 }
 0x22c   :  { %v845_v42 = vmax.f32 %v767_v40, 0.0  ;;  %v678_v44 = vpack.c.bf16 %v656_v39, %v655_v38 }
 0x22e   :  { %808 = vmatmul.bf16.gmra.mxu2 %v678_v44  ;;  %v876_v46 = vpack.c.bf16 %v845_v42, %v844_v41  ;;  %v2622_v44 = vld [vmem:[#allocation2 + $0x168] sm:$0xff] }
 0x22f   :  { %v607_v48 = vpop.f32.mrf.mxu1  ;;  %1378 = vmatpush.bf16.msrb.mxu1 %v2622_v44 }
 0x230   :  { %970 = vmatmul.bf16.vlgmr.msra.gmra.mxu3 %v876_v46  ;;  %v608_v50 = vadd.f32 %v3043_v30, %v607_v48 }
 0x231   :  { %v769_v49 = vpop.f32.mrf.mxu2 }
 0x232   :  { %v770_v52 = vadd.f32 %v3080_v31, %v769_v49  ;;  %v657_v55 = vmax.f32 %v608_v50, 0.0 }
 0x234   :  { %v846_v58 = vmax.f32 %v770_v52, 0.0 }
 0x237   :  { %v609_v51 = vpop.f32.mrf.mxu1 }
 0x238   :  { %v610_v53 = vadd.f32 %v3043_v30, %v609_v51 }
 0x239   :  { %v771_v54 = vpop.f32.mrf.mxu2 }
 0x23a   :  { %v658_v56 = vmax.f32 %v610_v53, 0.0  ;;  %v772_v57 = vadd.f32 %v3080_v31, %v771_v54 }
 0x23c   :  { %v847_v59 = vmax.f32 %v772_v57, 0.0  ;;  %v679_v60 = vpack.c.bf16 %v658_v56, %v657_v55 }
 0x23e   :  { %813 = vmatmul.bf16.gmra.mxu2 %v679_v60  ;;  %v877_v61 = vpack.c.bf16 %v847_v59, %v846_v58 }
 0x23f   :  { %v612_v62 = vpop.f32.mrf.mxu1 }
 0x240   :  { %975 = vmatmul.bf16.gmra.mxu3 %v877_v61  ;;  %v613_v1 = vadd.f32 %v3043_v30, %v612_v62  ;;  %v2609_v62 = vld [vmem:[#allocation2 + $0x100] sm:$0xff] }
 0x241   :  { %v774_v63 = vpop.f32.mrf.mxu2  ;;  %1176 = vmatpush.bf16.msrb.mxu0 %v2609_v62 }
 0x242   :  { %v775_v3 = vadd.f32 %v3080_v31, %v774_v63  ;;  %v659_v6 = vmax.f32 %v613_v1, 0.0 }
 0x244   :  { %v848_v10 = vmax.f32 %v775_v3, 0.0 }
 0x247   :  { %v614_v2 = vpop.f32.mrf.mxu1 }
 0x248   :  { %v615_v4 = vadd.f32 %v3043_v30, %v614_v2 }
 0x249   :  { %v776_v5 = vpop.f32.mrf.mxu2 }
 0x24a   :  { %v660_v8 = vmax.f32 %v615_v4, 0.0  ;;  %v777_v9 = vadd.f32 %v3080_v31, %v776_v5 }
 0x24c   :  { %v849_v11 = vmax.f32 %v777_v9, 0.0  ;;  %v680_v12 = vpack.c.bf16 %v660_v8, %v659_v6 }
 0x24e   :  { %818 = vmatmul.bf16.gmra.mxu2 %v680_v12  ;;  %v878_v13 = vpack.c.bf16 %v849_v11, %v848_v10  ;;  %v2621_v11 = vld [vmem:[#allocation2 + $0x160] sm:$0xff] }
 0x24f   :  { %v617_v15 = vpop.f32.mrf.mxu1  ;;  %1379 = vmatpush.bf16.msrb.mxu1 %v2621_v11 }
 0x250   :  { %980 = vmatmul.bf16.gmra.mxu3 %v878_v13  ;;  %v618_v17 = vadd.f32 %v3043_v30, %v617_v15 }
 0x251   :  { %v779_v16 = vpop.f32.mrf.mxu2 }
 0x252   :  { %v780_v7 = vadd.f32 %v3080_v31, %v779_v16  ;;  %v661_v21 = vmax.f32 %v618_v17, 0.0 }
 0x254   :  { %v850_v43 = vmax.f32 %v780_v7, 0.0 }
 0x257   :  { %v619_v18 = vpop.f32.mrf.mxu1 }
 0x258   :  { %v620_v19 = vadd.f32 %v3043_v30, %v619_v18 }
 0x259   :  { %v781_v20 = vpop.f32.mrf.mxu2 }
 0x25a   :  { %v662_v22 = vmax.f32 %v620_v19, 0.0  ;;  %v782_v23 = vadd.f32 %v3080_v31, %v781_v20 }
 0x25c   :  { %v851_v24 = vmax.f32 %v782_v23, 0.0  ;;  %v681_v25 = vpack.c.bf16 %v662_v22, %v661_v21 }
 0x25e   :  { %823 = vmatmul.bf16.gmra.mxu2 %v681_v25  ;;  %v879_v26 = vpack.c.bf16 %v851_v24, %v850_v43  ;;  %v2620_v24 = vld [vmem:[#allocation2 + $0x158] sm:$0xff] }
 0x25f   :  { %v622_v27 = vpop.f32.mrf.mxu1  ;;  %1380 = vmatpush.bf16.msrb.mxu1 %v2620_v24 }
 0x260   :  { %985 = vmatmul.bf16.gmra.mxu3 %v879_v26  ;;  %v623_v29 = vadd.f32 %v3043_v30, %v622_v27  ;;  %v3117_v27 = vld [vmem:[%s3670_s2 + $0x3] ss:$0 sm:$0xff] }
 0x261   :  { %v784_v45 = vpop.f32.mrf.mxu2 }
 0x262   :  { %v785_v33 = vadd.f32 %v3080_v31, %v784_v45  ;;  %v663_v36 = vmax.f32 %v623_v29, 0.0 }
 0x264   :  { %v852_v39 = vmax.f32 %v785_v33, 0.0 }
 0x267   :  { %v624_v32 = vpop.f32.mrf.mxu1 }
 0x268   :  { %v625_v34 = vadd.f32 %v3043_v30, %v624_v32 }
 0x269   :  { %v786_v35 = vpop.f32.mrf.mxu2 }
 0x26a   :  { %v664_v37 = vmax.f32 %v625_v34, 0.0  ;;  %v787_v38 = vadd.f32 %v3080_v31, %v786_v35 }
 0x26c   :  { %v853_v40 = vmax.f32 %v787_v38, 0.0  ;;  %v682_v41 = vpack.c.bf16 %v664_v37, %v663_v36  ;;  %v2632_v37 = vld [vmem:[#allocation2 + $0x1b8] sm:$0xff] }
 0x26d   :  { %1583 = vmatpush.bf16.msrb.mxu2 %v2632_v37 }
 0x26e   :  { %828 = vmatmul.bf16.gmra.mxu2 %v682_v41  ;;  %v880_v42 = vpack.c.bf16 %v853_v40, %v852_v39 }
 0x26f   :  { %v627_v46 = vpop.f32.mrf.mxu1 }
 0x270   :  { %990 = vmatmul.bf16.gmra.mxu3 %v880_v42  ;;  %v628_v48 = vadd.f32 %v3043_v30, %v627_v46 }
 0x271   :  { %v789_v47 = vpop.f32.mrf.mxu2 }
 0x272   :  { %v790_v50 = vadd.f32 %v3080_v31, %v789_v47  ;;  %v665_v53 = vmax.f32 %v628_v48, 0.0 }
 0x274   :  { %v854_v56 = vmax.f32 %v790_v50, 0.0 }
 0x277   :  { %v629_v49 = vpop.f32.mrf.mxu1 }
 0x278   :  { %v630_v51 = vadd.f32 %v3043_v30, %v629_v49 }
 0x279   :  { %v791_v52 = vpop.f32.mrf.mxu2 }
 0x27a   :  { %v666_v54 = vmax.f32 %v630_v51, 0.0  ;;  %v792_v55 = vadd.f32 %v3080_v31, %v791_v52 }
 0x27c   :  { %v855_v57 = vmax.f32 %v792_v55, 0.0  ;;  %v683_v58 = vpack.c.bf16 %v666_v54, %v665_v53 }
 0x27e   :  { %833 = vmatmul.bf16.gmra.mxu2 %v683_v58  ;;  %v881_v59 = vpack.c.bf16 %v855_v57, %v854_v56  ;;  %v2619_v57 = vld [vmem:[#allocation2 + $0x150] sm:$0xff] }
 0x27f   :  { %v632_v60 = vpop.f32.mrf.mxu1  ;;  %1381 = vmatpush.bf16.msrb.mxu1 %v2619_v57 }
 0x280   :  { %995 = vmatmul.bf16.gmra.mxu3 %v881_v59  ;;  %v633_v63 = vadd.f32 %v3043_v30, %v632_v60 }
 0x281   :  { %v794_v61 = vpop.f32.mrf.mxu2 }
 0x282   :  { %v795_v1 = vadd.f32 %v3080_v31, %v794_v61  ;;  %v667_v4 = vmax.f32 %v633_v63, 0.0 }
 0x284   :  { %v856_v8 = vmax.f32 %v795_v1, 0.0 }
 0x287   :  { %v634_v0 = vpop.f32.mrf.mxu1 }
 0x288   :  { %v635_v2 = vadd.f32 %v3043_v30, %v634_v0 }
 0x289   :  { %v796_v3 = vpop.f32.mrf.mxu2 }
 0x28a   :  { %v668_v5 = vmax.f32 %v635_v2, 0.0  ;;  %v797_v6 = vadd.f32 %v3080_v31, %v796_v3 }
 0x28c   :  { %v857_v9 = vmax.f32 %v797_v6, 0.0  ;;  %v684_v10 = vpack.c.bf16 %v668_v5, %v667_v4  ;;  %v2631_v5 = vld [vmem:[#allocation2 + $0x1b0] sm:$0xff] }
 0x28d   :  { %1584 = vmatpush.bf16.msrb.mxu2 %v2631_v5 }
 0x28e   :  { %838 = vmatmul.bf16.gmra.mxu2 %v684_v10  ;;  %v882_v12 = vpack.c.bf16 %v857_v9, %v856_v8 }
 0x290   :  { %1000 = vmatmul.bf16.gmra.mxu3 %v882_v12 }
 0x291   :  { %v799_v13 = vpop.f32.mrf.mxu2 }
 0x292   :  { %v800_v14 = vadd.f32 %v3080_v31, %v799_v13 }
 0x294   :  { %v858_v30 = vmax.f32 %v800_v14, 0.0 }
 0x299   :  { %v801_v15 = vpop.f32.mrf.mxu2 }
 0x29a   :  { %v802_v16 = vadd.f32 %v3080_v31, %v801_v15 }
 0x29c   :  { %v859_v17 = vmax.f32 %v802_v16, 0.0 }
 0x29e   :  { %v883_v18 = vpack.c.bf16 %v859_v17, %v858_v30 }
 0x2a0   :  { %1005 = vmatmul.bf16.gmra.mxu3 %v883_v18 }
 0x2a1   :  { %v804_v7 = vpop.f32.mrf.mxu2 }
 0x2a2   :  { %v805_v19 = vadd.f32 %v3080_v31, %v804_v7 }
 0x2a4   :  { %v860_v22 = vmax.f32 %v805_v19, 0.0 }
 0x2a9   :  { %v806_v20 = vpop.f32.mrf.mxu2 }
 0x2aa   :  { %v807_v21 = vadd.f32 %v3080_v31, %v806_v20 }
 0x2ac   :  { %v861_v23 = vmax.f32 %v807_v21, 0.0 }
 0x2ae   :  { %v884_v43 = vpack.c.bf16 %v861_v23, %v860_v22  ;;  %v2618_v22 = vld [vmem:[#allocation2 + $0x148] sm:$0xff] }
 0x2af   :  { %1382 = vmatpush.bf16.msrb.mxu1 %v2618_v22  ;;  %v3154_v22 = vld [vmem:[%s3670_s2 + $0x4] ss:$0 sm:$0xff] }
 0x2b0   :  { %1010 = vmatmul.bf16.gmra.mxu3 %v884_v43 }
 0x2b1   :  { %v809_v25 = vpop.f32.mrf.mxu2 }
 0x2b2   :  { %v810_v45 = vadd.f32 %v3080_v31, %v809_v25 }
 0x2b3   :  { %v971_v26 = vpop.f32.mrf.mxu3 }
 0x2b4   :  { %v972_v29 = vadd.f32 %v3117_v27, %v971_v26  ;;  %v862_v34 = vmax.f32 %v810_v45, 0.0 }
 0x2b6   :  { %v1051_v38 = vmax.f32 %v972_v29, 0.0 }
 0x2b9   :  { %v811_v28 = vpop.f32.mrf.mxu2 }
 0x2ba   :  { %v812_v32 = vadd.f32 %v3080_v31, %v811_v28 }
 0x2bb   :  { %v973_v33 = vpop.f32.mrf.mxu3 }
 0x2bc   :  { %v863_v35 = vmax.f32 %v812_v32, 0.0  ;;  %v974_v36 = vadd.f32 %v3117_v27, %v973_v33 }
 0x2be   :  { %v1052_v39 = vmax.f32 %v974_v36, 0.0  ;;  %v885_v40 = vpack.c.bf16 %v863_v35, %v862_v34  ;;  %v2630_v35 = vld [vmem:[#allocation2 + $0x1a8] sm:$0xff] }
 0x2bf   :  { %1585 = vmatpush.bf16.msrb.mxu2 %v2630_v35 }
 0x2c0   :  { %v1083_v41 = vpack.c.bf16 %v1052_v39, %v1051_v38  ;;  %1015 = vmatmul.bf16.gmra.mxu3 %v885_v40 }
 0x2c1   :  { %v814_v42 = vpop.f32.mrf.mxu2 }
 0x2c2   :  { %1177 = vmatmul.bf16.vlgmr.msrb.gmra.mxu0 %v1083_v41  ;;  %v815_v46 = vadd.f32 %v3080_v31, %v814_v42 }
 0x2c3   :  { %v976_v44 = vpop.f32.mrf.mxu3 }
 0x2c4   :  { %v977_v48 = vadd.f32 %v3117_v27, %v976_v44  ;;  %v864_v51 = vmax.f32 %v815_v46, 0.0 }
 0x2c6   :  { %v1053_v54 = vmax.f32 %v977_v48, 0.0 }
 0x2c9   :  { %v816_v47 = vpop.f32.mrf.mxu2 }
 0x2ca   :  { %v817_v49 = vadd.f32 %v3080_v31, %v816_v47 }
 0x2cb   :  { %v978_v50 = vpop.f32.mrf.mxu3 }
 0x2cc   :  { %v865_v52 = vmax.f32 %v817_v49, 0.0  ;;  %v979_v53 = vadd.f32 %v3117_v27, %v978_v50 }
 0x2ce   :  { %v1054_v55 = vmax.f32 %v979_v53, 0.0  ;;  %v886_v56 = vpack.c.bf16 %v865_v52, %v864_v51 }
 0x2d0   :  { %1020 = vmatmul.bf16.gmra.mxu3 %v886_v56  ;;  %v1084_v58 = vpack.c.bf16 %v1054_v55, %v1053_v54  ;;  %v2617_v55 = vld [vmem:[#allocation2 + $0x140] sm:$0xff] }
 0x2d1   :  { %v819_v59 = vpop.f32.mrf.mxu2  ;;  %1383 = vmatpush.bf16.msrb.mxu1 %v2617_v55 }
 0x2d2   :  { %1182 = vmatmul.bf16.gmra.mxu0 %v1084_v58  ;;  %v820_v61 = vadd.f32 %v3080_v31, %v819_v59  ;;  %v2629_v59 = vld [vmem:[#allocation2 + $0x1a0] sm:$0xff] }
 0x2d3   :  { %v981_v60 = vpop.f32.mrf.mxu3  ;;  %1586 = vmatpush.bf16.msrb.mxu2 %v2629_v59 }
 0x2d4   :  { %v982_v63 = vadd.f32 %v3117_v27, %v981_v60  ;;  %v866_v2 = vmax.f32 %v820_v61, 0.0 }
 0x2d6   :  { %v1055_v6 = vmax.f32 %v982_v63, 0.0 }
 0x2d9   :  { %v821_v62 = vpop.f32.mrf.mxu2 }
 0x2da   :  { %v822_v0 = vadd.f32 %v3080_v31, %v821_v62 }
 0x2db   :  { %v983_v1 = vpop.f32.mrf.mxu3 }
 0x2dc   :  { %v867_v3 = vmax.f32 %v822_v0, 0.0  ;;  %v984_v4 = vadd.f32 %v3117_v27, %v983_v1 }
 0x2de   :  { %v1056_v8 = vmax.f32 %v984_v4, 0.0  ;;  %v887_v9 = vpack.c.bf16 %v867_v3, %v866_v2 }
 0x2e0   :  { %1025 = vmatmul.bf16.gmra.mxu3 %v887_v9  ;;  %v1085_v10 = vpack.c.bf16 %v1056_v8, %v1055_v6 }
 0x2e1   :  { %v824_v11 = vpop.f32.mrf.mxu2 }
 0x2e2   :  { %1187 = vmatmul.bf16.gmra.mxu0 %v1085_v10  ;;  %v825_v13 = vadd.f32 %v3080_v31, %v824_v11 }
 0x2e3   :  { %v986_v12 = vpop.f32.mrf.mxu3 }
 0x2e4   :  { %v987_v15 = vadd.f32 %v3117_v27, %v986_v12  ;;  %v868_v17 = vmax.f32 %v825_v13, 0.0 }
 0x2e6   :  { %v1057_v19 = vmax.f32 %v987_v15, 0.0 }
 0x2e9   :  { %v826_v14 = vpop.f32.mrf.mxu2 }
 0x2ea   :  { %v827_v16 = vadd.f32 %v3080_v31, %v826_v14 }
 0x2eb   :  { %v988_v30 = vpop.f32.mrf.mxu3 }
 0x2ec   :  { %v869_v18 = vmax.f32 %v827_v16, 0.0  ;;  %v989_v7 = vadd.f32 %v3117_v27, %v988_v30  ;;  %v2628_v30 = vld [vmem:[#allocation2 + $0x198] sm:$0xff] }
 0x2ed   :  { %1587 = vmatpush.bf16.msrb.mxu2 %v2628_v30  ;;  %v2626_v30 = vld [vmem:[#allocation2 + $0x188] sm:$0xff] }
 0x2ee   :  { %v1058_v20 = vmax.f32 %v989_v7, 0.0  ;;  %v888_v21 = vpack.c.bf16 %v869_v18, %v868_v17 }
 0x2f0   :  { %1030 = vmatmul.bf16.gmra.mxu3 %v888_v21  ;;  %v1086_v23 = vpack.c.bf16 %v1058_v20, %v1057_v19 }
 0x2f1   :  { %v829_v43 = vpop.f32.mrf.mxu2 }
 0x2f2   :  { %1192 = vmatmul.bf16.gmra.mxu0 %v1086_v23  ;;  %v830_v25 = vadd.f32 %v3080_v31, %v829_v43 }
 0x2f3   :  { %v991_v24 = vpop.f32.mrf.mxu3 }
 0x2f4   :  { %v992_v45 = vadd.f32 %v3117_v27, %v991_v24  ;;  %v870_v32 = vmax.f32 %v830_v25, 0.0 }
 0x2f6   :  { %v1059_v36 = vmax.f32 %v992_v45, 0.0 }
 0x2f9   :  { %v831_v26 = vpop.f32.mrf.mxu2 }
 0x2fa   :  { %v832_v28 = vadd.f32 %v3080_v31, %v831_v26 }
 0x2fb   :  { %v993_v29 = vpop.f32.mrf.mxu3 }
 0x2fc   :  { %v871_v33 = vmax.f32 %v832_v28, 0.0  ;;  %v994_v34 = vadd.f32 %v3117_v27, %v993_v29 }
 0x2fe   :  { %v1060_v37 = vmax.f32 %v994_v34, 0.0  ;;  %v889_v38 = vpack.c.bf16 %v871_v33, %v870_v32 }
 0x300   :  { %1035 = vmatmul.bf16.gmra.mxu3 %v889_v38  ;;  %v1087_v39 = vpack.c.bf16 %v1060_v37, %v1059_v36  ;;  %v2640_v36 = vld [vmem:[#allocation2 + $0x1f8] sm:$0xff] }
 0x301   :  { %v834_v40 = vpop.f32.mrf.mxu2  ;;  %1790 = vmatpush.bf16.msrb.mxu3 %v2640_v36 }
 0x302   :  { %1197 = vmatmul.bf16.gmra.mxu0 %v1087_v39  ;;  %v835_v42 = vadd.f32 %v3080_v31, %v834_v40 }
 0x303   :  { %v996_v41 = vpop.f32.mrf.mxu3 }
 0x304   :  { %v997_v46 = vadd.f32 %v3117_v27, %v996_v41  ;;  %v872_v49 = vmax.f32 %v835_v42, 0.0 }
 0x306   :  { %v1061_v52 = vmax.f32 %v997_v46, 0.0 }
 0x309   :  { %v836_v44 = vpop.f32.mrf.mxu2 }
 0x30a   :  { %v837_v47 = vadd.f32 %v3080_v31, %v836_v44 }
 0x30b   :  { %v998_v48 = vpop.f32.mrf.mxu3 }
 0x30c   :  { %v873_v50 = vmax.f32 %v837_v47, 0.0  ;;  %v999_v51 = vadd.f32 %v3117_v27, %v998_v48  ;;  %v2627_v48 = vld [vmem:[#allocation2 + $0x190] sm:$0xff] }
 0x30d   :  { %1588 = vmatpush.bf16.msrb.mxu2 %v2627_v48 }
 0x30e   :  { %v1062_v53 = vmax.f32 %v999_v51, 0.0  ;;  %v890_v54 = vpack.c.bf16 %v873_v50, %v872_v49 }
 0x310   :  { %1040 = vmatmul.bf16.gmra.mxu3 %v890_v54  ;;  %v1088_v56 = vpack.c.bf16 %v1062_v53, %v1061_v52 }
 0x311   :  { %v839_v57 = vpop.f32.mrf.mxu2  ;;  %1589 = vmatpush.bf16.msrb.mxu2 %v2626_v30 }
 0x312   :  { %1202 = vmatmul.bf16.gmra.mxu0 %v1088_v56  ;;  %v840_v60 = vadd.f32 %v3080_v31, %v839_v57 }
 0x313   :  { %v1001_v58 = vpop.f32.mrf.mxu3 }
 0x314   :  { %v1002_v62 = vadd.f32 %v3117_v27, %v1001_v58  ;;  %v874_v1 = vmax.f32 %v840_v60, 0.0 }
 0x316   :  { %v1063_v4 = vmax.f32 %v1002_v62, 0.0 }
 0x319   :  { %v841_v61 = vpop.f32.mrf.mxu2 }
 0x31a   :  { %v842_v63 = vadd.f32 %v3080_v31, %v841_v61 }
 0x31b   :  { %v1003_v0 = vpop.f32.mrf.mxu3 }
 0x31c   :  { %v875_v2 = vmax.f32 %v842_v63, 0.0  ;;  %v1004_v3 = vadd.f32 %v3117_v27, %v1003_v0 }
 0x31e   :  { %v1064_v5 = vmax.f32 %v1004_v3, 0.0  ;;  %v891_v6 = vpack.c.bf16 %v875_v2, %v874_v1 }
 0x320   :  { %1045 = vmatmul.bf16.gmra.mxu3 %v891_v6  ;;  %v1089_v8 = vpack.c.bf16 %v1064_v5, %v1063_v4  ;;  %v2639_v4 = vld [vmem:[#allocation2 + $0x1f0] sm:$0xff] }
 0x321   :  { %1791 = vmatpush.bf16.msrb.mxu3 %v2639_v4 }
 0x322   :  { %1207 = vmatmul.bf16.gmra.mxu0 %v1089_v8 }
 0x323   :  { %v1006_v9 = vpop.f32.mrf.mxu3 }
 0x324   :  { %v1007_v10 = vadd.f32 %v3117_v27, %v1006_v9 }
 0x326   :  { %v1065_v13 = vmax.f32 %v1007_v10, 0.0 }
 0x32b   :  { %v1008_v11 = vpop.f32.mrf.mxu3 }
 0x32c   :  { %v1009_v12 = vadd.f32 %v3117_v27, %v1008_v11 }
 0x32e   :  { %v1066_v14 = vmax.f32 %v1009_v12, 0.0 }
 0x330   :  { %v1090_v31 = vpack.c.bf16 %v1066_v14, %v1065_v13 }
 0x332   :  { %1212 = vmatmul.bf16.gmra.mxu0 %v1090_v31 }
 0x333   :  { %v1011_v15 = vpop.f32.mrf.mxu3 }
 0x334   :  { %v1012_v16 = vadd.f32 %v3117_v27, %v1011_v15 }
 0x336   :  { %v1067_v7 = vmax.f32 %v1012_v16, 0.0 }
 0x33b   :  { %v1013_v17 = vpop.f32.mrf.mxu3 }
 0x33c   :  { %v1014_v18 = vadd.f32 %v3117_v27, %v1013_v17 }
 0x33e   :  { %v1068_v19 = vmax.f32 %v1014_v18, 0.0 }
 0x33f   :  { %v1178_v20 = vpop.f32.mrf.mxu0 }
 0x340   :  { %v1091_v21 = vpack.c.bf16 %v1068_v19, %v1067_v7  ;;  %v1179_v43 = vadd.f32 %v3154_v22, %v1178_v20 }
 0x342   :  { %1217 = vmatmul.bf16.gmra.mxu0 %v1091_v21  ;;  %v1258_v26 = vmax.f32 %v1179_v43, 0.0 }
 0x343   :  { %v1016_v23 = vpop.f32.mrf.mxu3 }
 0x344   :  { %v1017_v45 = vadd.f32 %v3117_v27, %v1016_v23 }
 0x346   :  { %v1069_v34 = vmax.f32 %v1017_v45, 0.0 }
 0x347   :  { %v1180_v24 = vpop.f32.mrf.mxu0 }
 0x348   :  { %v1181_v25 = vadd.f32 %v3154_v22, %v1180_v24 }
 0x34a   :  { %v1259_v28 = vmax.f32 %v1181_v25, 0.0 }
 0x34b   :  { %v1018_v29 = vpop.f32.mrf.mxu3 }
 0x34c   :  { %v1290_v32 = vpack.c.bf16 %v1259_v28, %v1258_v26  ;;  %v1019_v33 = vadd.f32 %v3117_v27, %v1018_v29 }
 0x34e   :  { %v1070_v35 = vmax.f32 %v1019_v33, 0.0  ;;  %1384 = vmatmul.bf16.vlgmr.msrb.gmra.mxu1 %v1290_v32 }
 0x34f   :  { %v1183_v37 = vpop.f32.mrf.mxu0 }
 0x350   :  { %v1092_v38 = vpack.c.bf16 %v1070_v35, %v1069_v34  ;;  %v1184_v40 = vadd.f32 %v3154_v22, %v1183_v37  ;;  %v2638_v34 = vld [vmem:[#allocation2 + $0x1e8] sm:$0xff] }
 0x351   :  { %1792 = vmatpush.bf16.msrb.mxu3 %v2638_v34 }
 0x352   :  { %1222 = vmatmul.bf16.gmra.mxu0 %v1092_v38  ;;  %v1260_v44 = vmax.f32 %v1184_v40, 0.0 }
 0x353   :  { %v1021_v39 = vpop.f32.mrf.mxu3 }
 0x354   :  { %v1022_v46 = vadd.f32 %v3117_v27, %v1021_v39 }
 0x356   :  { %v1071_v52 = vmax.f32 %v1022_v46, 0.0 }
 0x357   :  { %v1185_v41 = vpop.f32.mrf.mxu0 }
 0x358   :  { %v1186_v42 = vadd.f32 %v3154_v22, %v1185_v41 }
 0x35a   :  { %v1261_v47 = vmax.f32 %v1186_v42, 0.0 }
 0x35b   :  { %v1023_v49 = vpop.f32.mrf.mxu3 }
 0x35c   :  { %v1024_v50 = vadd.f32 %v3117_v27, %v1023_v49  ;;  %v1291_v51 = vpack.c.bf16 %v1261_v47, %v1260_v44  ;;  %v2625_v49 = vld [vmem:[#allocation2 + $0x180] sm:$0xff] }
 0x35d   :  { %1590 = vmatpush.bf16.msrb.mxu2 %v2625_v49 }
 0x35e   :  { %v1072_v53 = vmax.f32 %v1024_v50, 0.0  ;;  %1389 = vmatmul.bf16.gmra.mxu1 %v1291_v51 }
 0x35f   :  { %v1188_v54 = vpop.f32.mrf.mxu0 }
 0x360   :  { %v1093_v55 = vpack.c.bf16 %v1072_v53, %v1071_v52  ;;  %v1189_v57 = vadd.f32 %v3154_v22, %v1188_v54 }
 0x362   :  { %1227 = vmatmul.bf16.gmra.mxu0 %v1093_v55  ;;  %v1262_v60 = vmax.f32 %v1189_v57, 0.0 }
 0x363   :  { %v1026_v56 = vpop.f32.mrf.mxu3 }
 0x364   :  { %v1027_v61 = vadd.f32 %v3117_v27, %v1026_v56 }
 0x366   :  { %v1073_v2 = vmax.f32 %v1027_v61, 0.0 }
 0x367   :  { %v1190_v58 = vpop.f32.mrf.mxu0 }
 0x368   :  { %v1191_v59 = vadd.f32 %v3154_v22, %v1190_v58 }
 0x36a   :  { %v1263_v62 = vmax.f32 %v1191_v59, 0.0 }
 0x36b   :  { %v1028_v63 = vpop.f32.mrf.mxu3 }
 0x36c   :  { %v1029_v0 = vadd.f32 %v3117_v27, %v1028_v63  ;;  %v1292_v1 = vpack.c.bf16 %v1263_v62, %v1262_v60 }
 0x36e   :  { %v1074_v3 = vmax.f32 %v1029_v0, 0.0  ;;  %1394 = vmatmul.bf16.gmra.mxu1 %v1292_v1 }
 0x36f   :  { %v1193_v5 = vpop.f32.mrf.mxu0 }
 0x370   :  { %v1094_v6 = vpack.c.bf16 %v1074_v3, %v1073_v2  ;;  %v1194_v9 = vadd.f32 %v3154_v22, %v1193_v5  ;;  %v2637_v2 = vld [vmem:[#allocation2 + $0x1e0] sm:$0xff] }
 0x371   :  { %1793 = vmatpush.bf16.msrb.mxu3 %v2637_v2 }
 0x372   :  { %1232 = vmatmul.bf16.gmra.mxu0 %v1094_v6  ;;  %v1264_v12 = vmax.f32 %v1194_v9, 0.0 }
 0x373   :  { %v1031_v8 = vpop.f32.mrf.mxu3 }
 0x374   :  { %v1032_v13 = vadd.f32 %v3117_v27, %v1031_v8 }
 0x376   :  { %v1075_v17 = vmax.f32 %v1032_v13, 0.0 }
 0x377   :  { %v1195_v10 = vpop.f32.mrf.mxu0 }
 0x378   :  { %v1196_v11 = vadd.f32 %v3154_v22, %v1195_v10 }
 0x37a   :  { %v1265_v14 = vmax.f32 %v1196_v11, 0.0 }
 0x37b   :  { %v1033_v31 = vpop.f32.mrf.mxu3 }
 0x37c   :  { %v1034_v15 = vadd.f32 %v3117_v27, %v1033_v31  ;;  %v1293_v16 = vpack.c.bf16 %v1265_v14, %v1264_v12 }
 0x37e   :  { %v1076_v18 = vmax.f32 %v1034_v15, 0.0  ;;  %1399 = vmatmul.bf16.gmra.mxu1 %v1293_v16 }
 0x37f   :  { %v1198_v7 = vpop.f32.mrf.mxu0 }
 0x380   :  { %v1095_v19 = vpack.c.bf16 %v1076_v18, %v1075_v17  ;;  %v1199_v21 = vadd.f32 %v3154_v22, %v1198_v7  ;;  %v3191_v17 = vld [vmem:[%s3670_s2 + $0x5] ss:$0 sm:$0xff]  ;;  %v2636_v18 = vld [vmem:[#allocation2 + $0x1d8] sm:$0xff] }
 0x381   :  { %1794 = vmatpush.bf16.msrb.mxu3 %v2636_v18 }
 0x382   :  { %1237 = vmatmul.bf16.gmra.mxu0 %v1095_v19  ;;  %v1266_v24 = vmax.f32 %v1199_v21, 0.0 }
 0x383   :  { %v1036_v20 = vpop.f32.mrf.mxu3 }
 0x384   :  { %v1037_v25 = vadd.f32 %v3117_v27, %v1036_v20 }
 0x386   :  { %v1077_v32 = vmax.f32 %v1037_v25, 0.0 }
 0x387   :  { %v1200_v23 = vpop.f32.mrf.mxu0 }
 0x388   :  { %v1201_v43 = vadd.f32 %v3154_v22, %v1200_v23 }
 0x38a   :  { %v1267_v26 = vmax.f32 %v1201_v43, 0.0 }
 0x38b   :  { %v1038_v45 = vpop.f32.mrf.mxu3 }
 0x38c   :  { %v1294_v28 = vpack.c.bf16 %v1267_v26, %v1266_v24  ;;  %v1039_v29 = vadd.f32 %v3117_v27, %v1038_v45 }
 0x38e   :  { %v1078_v33 = vmax.f32 %v1039_v29, 0.0  ;;  %1404 = vmatmul.bf16.gmra.mxu1 %v1294_v28 }
 0x38f   :  { %v1203_v35 = vpop.f32.mrf.mxu0 }
 0x390   :  { %v1096_v36 = vpack.c.bf16 %v1078_v33, %v1077_v32  ;;  %v1204_v38 = vadd.f32 %v3154_v22, %v1203_v35 }
 0x392   :  { %1242 = vmatmul.bf16.gmra.mxu0 %v1096_v36  ;;  %v1268_v41 = vmax.f32 %v1204_v38, 0.0 }
 0x393   :  { %v1041_v37 = vpop.f32.mrf.mxu3 }
 0x394   :  { %v1042_v42 = vadd.f32 %v3117_v27, %v1041_v37 }
 0x396   :  { %v1079_v50 = vmax.f32 %v1042_v42, 0.0 }
 0x397   :  { %v1205_v39 = vpop.f32.mrf.mxu0 }
 0x398   :  { %v1206_v40 = vadd.f32 %v3154_v22, %v1205_v39 }
 0x39a   :  { %v1269_v44 = vmax.f32 %v1206_v40, 0.0 }
 0x39b   :  { %v1043_v46 = vpop.f32.mrf.mxu3 }
 0x39c   :  { %v1295_v47 = vpack.c.bf16 %v1269_v44, %v1268_v41  ;;  %v1044_v48 = vadd.f32 %v3117_v27, %v1043_v46 }
 0x39e   :  { %v1080_v51 = vmax.f32 %v1044_v48, 0.0  ;;  %1409 = vmatmul.bf16.gmra.mxu1 %v1295_v47 }
 0x39f   :  { %v1208_v52 = vpop.f32.mrf.mxu0 }
 0x3a0   :  { %v1097_v53 = vpack.c.bf16 %v1080_v51, %v1079_v50  ;;  %v1209_v55 = vadd.f32 %v3154_v22, %v1208_v52  ;;  %v2635_v50 = vld [vmem:[#allocation2 + $0x1d0] sm:$0xff] }
 0x3a1   :  { %1795 = vmatpush.bf16.msrb.mxu3 %v2635_v50 }
 0x3a2   :  { %1247 = vmatmul.bf16.gmra.mxu0 %v1097_v53  ;;  %v1270_v58 = vmax.f32 %v1209_v55, 0.0 }
 0x3a3   :  { %v1046_v54 = vpop.f32.mrf.mxu3 }
 0x3a4   :  { %v1047_v59 = vadd.f32 %v3117_v27, %v1046_v54 }
 0x3a6   :  { %v1081_v0 = vmax.f32 %v1047_v59, 0.0 }
 0x3a7   :  { %v1210_v56 = vpop.f32.mrf.mxu0 }
 0x3a8   :  { %v1211_v57 = vadd.f32 %v3154_v22, %v1210_v56 }
 0x3aa   :  { %v1271_v60 = vmax.f32 %v1211_v57, 0.0 }
 0x3ab   :  { %v1048_v61 = vpop.f32.mrf.mxu3 }
 0x3ac   :  { %v1296_v62 = vpack.c.bf16 %v1271_v60, %v1270_v58  ;;  %v1049_v63 = vadd.f32 %v3117_v27, %v1048_v61 }
 0x3ae   :  { %v1082_v1 = vmax.f32 %v1049_v63, 0.0  ;;  %1414 = vmatmul.bf16.gmra.mxu1 %v1296_v62 }
 0x3af   :  { %v1213_v3 = vpop.f32.mrf.mxu0 }
 0x3b0   :  { %v1098_v4 = vpack.c.bf16 %v1082_v1, %v1081_v0  ;;  %v1214_v5 = vadd.f32 %v3154_v22, %v1213_v3 }
 0x3b2   :  { %1252 = vmatmul.bf16.gmra.mxu0 %v1098_v4  ;;  %v1272_v9 = vmax.f32 %v1214_v5, 0.0 }
 0x3b7   :  { %v1215_v6 = vpop.f32.mrf.mxu0 }
 0x3b8   :  { %v1216_v8 = vadd.f32 %v3154_v22, %v1215_v6 }
 0x3ba   :  { %v1273_v10 = vmax.f32 %v1216_v8, 0.0 }
 0x3bc   :  { %v1297_v11 = vpack.c.bf16 %v1273_v10, %v1272_v9 }
 0x3be   :  { %1419 = vmatmul.bf16.gmra.mxu1 %v1297_v11 }
 0x3bf   :  { %v1218_v12 = vpop.f32.mrf.mxu0 }
 0x3c0   :  { %v1219_v27 = vadd.f32 %v3154_v22, %v1218_v12 }
 0x3c2   :  { %v1274_v31 = vmax.f32 %v1219_v27, 0.0 }
 0x3c7   :  { %v1220_v13 = vpop.f32.mrf.mxu0 }
 0x3c8   :  { %v1221_v14 = vadd.f32 %v3154_v22, %v1220_v13 }
 0x3ca   :  { %v1275_v15 = vmax.f32 %v1221_v14, 0.0 }
 0x3cb   :  { %v1385_v16 = vpop.f32.mrf.mxu1 }
 0x3cc   :  { %v1298_v30 = vpack.c.bf16 %v1275_v15, %v1274_v31  ;;  %v1386_v19 = vadd.f32 %v3191_v17, %v1385_v16  ;;  %v2634_v31 = vld [vmem:[#allocation2 + $0x1c8] sm:$0xff] }
 0x3cd   :  { %1796 = vmatpush.bf16.msrb.mxu3 %v2634_v31 }
 0x3ce   :  { %1424 = vmatmul.bf16.gmra.mxu1 %v1298_v30  ;;  %v1465_v23 = vmax.f32 %v1386_v19, 0.0 }
 0x3cf   :  { %v1223_v7 = vpop.f32.mrf.mxu0 }
 0x3d0   :  { %v1224_v43 = vadd.f32 %v3154_v22, %v1223_v7 }
 0x3d2   :  { %v1276_v28 = vmax.f32 %v1224_v43, 0.0 }
 0x3d3   :  { %v1387_v20 = vpop.f32.mrf.mxu1 }
 0x3d4   :  { %v1388_v21 = vadd.f32 %v3191_v17, %v1387_v20 }
 0x3d6   :  { %v1466_v24 = vmax.f32 %v1388_v21, 0.0 }
 0x3d7   :  { %v1225_v25 = vpop.f32.mrf.mxu0 }
 0x3d8   :  { %v1497_v26 = vpack.c.bf16 %v1466_v24, %v1465_v23  ;;  %v1226_v45 = vadd.f32 %v3154_v22, %v1225_v25 }
 0x3da   :  { %v1277_v29 = vmax.f32 %v1226_v45, 0.0  ;;  %1591 = vmatmul.bf16.vlgmr.msrb.gmra.mxu2 %v1497_v26 }
 0x3db   :  { %v1390_v32 = vpop.f32.mrf.mxu1 }
 0x3dc   :  { %v1299_v33 = vpack.c.bf16 %v1277_v29, %v1276_v28  ;;  %v1391_v35 = vadd.f32 %v3191_v17, %v1390_v32 }
 0x3de   :  { %1429 = vmatmul.bf16.gmra.mxu1 %v1299_v33  ;;  %v1467_v38 = vmax.f32 %v1391_v35, 0.0 }
 0x3df   :  { %v1228_v34 = vpop.f32.mrf.mxu0 }
 0x3e0   :  { %v1229_v39 = vadd.f32 %v3154_v22, %v1228_v34 }
 0x3e2   :  { %v1278_v46 = vmax.f32 %v1229_v39, 0.0 }
 0x3e3   :  { %v1392_v36 = vpop.f32.mrf.mxu1 }
 0x3e4   :  { %v1393_v37 = vadd.f32 %v3191_v17, %v1392_v36 }
 0x3e6   :  { %v1468_v40 = vmax.f32 %v1393_v37, 0.0 }
 0x3e7   :  { %v1230_v41 = vpop.f32.mrf.mxu0 }
 0x3e8   :  { %v1231_v42 = vadd.f32 %v3154_v22, %v1230_v41  ;;  %v1498_v44 = vpack.c.bf16 %v1468_v40, %v1467_v38 }
 0x3ea   :  { %v1279_v47 = vmax.f32 %v1231_v42, 0.0  ;;  %1596 = vmatmul.bf16.gmra.mxu2 %v1498_v44 }
 0x3eb   :  { %v1395_v48 = vpop.f32.mrf.mxu1 }
 0x3ec   :  { %v1300_v49 = vpack.c.bf16 %v1279_v47, %v1278_v46  ;;  %v1396_v52 = vadd.f32 %v3191_v17, %v1395_v48  ;;  %v2633_v46 = vld [vmem:[#allocation2 + $0x1c0] sm:$0xff] }
 0x3ed   :  { %1797 = vmatpush.bf16.msrb.mxu3 %v2633_v46 }
 0x3ee   :  { %1434 = vmatmul.bf16.gmra.mxu1 %v1300_v49  ;;  %v1469_v55 = vmax.f32 %v1396_v52, 0.0 }
 0x3ef   :  { %v1233_v51 = vpop.f32.mrf.mxu0 }
 0x3f0   :  { %v1234_v56 = vadd.f32 %v3154_v22, %v1233_v51 }
 0x3f2   :  { %v1280_v61 = vmax.f32 %v1234_v56, 0.0 }
 0x3f3   :  { %v1397_v53 = vpop.f32.mrf.mxu1 }
 0x3f4   :  { %v1398_v54 = vadd.f32 %v3191_v17, %v1397_v53 }
 0x3f6   :  { %v1470_v57 = vmax.f32 %v1398_v54, 0.0 }
 0x3f7   :  { %v1235_v58 = vpop.f32.mrf.mxu0 }
 0x3f8   :  { %v1236_v59 = vadd.f32 %v3154_v22, %v1235_v58  ;;  %v1499_v60 = vpack.c.bf16 %v1470_v57, %v1469_v55 }
 0x3fa   :  { %v1281_v62 = vmax.f32 %v1236_v59, 0.0  ;;  %1601 = vmatmul.bf16.gmra.mxu2 %v1499_v60 }
 0x3fb   :  { %v1400_v63 = vpop.f32.mrf.mxu1 }
 0x3fc   :  { %v1301_v0 = vpack.c.bf16 %v1281_v62, %v1280_v61  ;;  %v1401_v2 = vadd.f32 %v3191_v17, %v1400_v63 }
 0x3fe   :  { %1439 = vmatmul.bf16.gmra.mxu1 %v1301_v0  ;;  %v1471_v5 = vmax.f32 %v1401_v2, 0.0 }
 0x3ff   :  { %v1238_v1 = vpop.f32.mrf.mxu0 }
 0x400   :  { %v1239_v6 = vadd.f32 %v3154_v22, %v1238_v1 }
 0x402   :  { %v1282_v12 = vmax.f32 %v1239_v6, 0.0 }
 0x403   :  { %v1402_v3 = vpop.f32.mrf.mxu1 }
 0x404   :  { %v1403_v4 = vadd.f32 %v3191_v17, %v1402_v3 }
 0x406   :  { %v1472_v8 = vmax.f32 %v1403_v4, 0.0 }
 0x407   :  { %v1240_v9 = vpop.f32.mrf.mxu0 }
 0x408   :  { %v1241_v10 = vadd.f32 %v3154_v22, %v1240_v9  ;;  %v1500_v11 = vpack.c.bf16 %v1472_v8, %v1471_v5 }
 0x40a   :  { %v1283_v27 = vmax.f32 %v1241_v10, 0.0  ;;  %1606 = vmatmul.bf16.gmra.mxu2 %v1500_v11 }
 0x40b   :  { %v1405_v13 = vpop.f32.mrf.mxu1 }
 0x40c   :  { %v1302_v14 = vpack.c.bf16 %v1283_v27, %v1282_v12  ;;  %v1406_v16 = vadd.f32 %v3191_v17, %v1405_v13  ;;  %v3228_v12 = vld [vmem:[%s3670_s2 + $0x6] ss:$0 sm:$0xff] }
 0x40e   :  { %1444 = vmatmul.bf16.gmra.mxu1 %v1302_v14  ;;  %v1473_v7 = vmax.f32 %v1406_v16, 0.0 }
 0x40f   :  { %v1243_v15 = vpop.f32.mrf.mxu0 }
 0x410   :  { %v1244_v19 = vadd.f32 %v3154_v22, %v1243_v15 }
 0x412   :  { %v1284_v24 = vmax.f32 %v1244_v19, 0.0 }
 0x413   :  { %v1407_v30 = vpop.f32.mrf.mxu1 }
 0x414   :  { %v1408_v18 = vadd.f32 %v3191_v17, %v1407_v30 }
 0x416   :  { %v1474_v20 = vmax.f32 %v1408_v18, 0.0 }
 0x417   :  { %v1245_v21 = vpop.f32.mrf.mxu0 }
 0x418   :  { %v1501_v23 = vpack.c.bf16 %v1474_v20, %v1473_v7  ;;  %v1246_v43 = vadd.f32 %v3154_v22, %v1245_v21 }
 0x41a   :  { %v1285_v25 = vmax.f32 %v1246_v43, 0.0  ;;  %1611 = vmatmul.bf16.gmra.mxu2 %v1501_v23 }
 0x41b   :  { %v1410_v26 = vpop.f32.mrf.mxu1 }
 0x41c   :  { %v1303_v45 = vpack.c.bf16 %v1285_v25, %v1284_v24  ;;  %v1411_v29 = vadd.f32 %v3191_v17, %v1410_v26 }
 0x41e   :  { %1449 = vmatmul.bf16.gmra.mxu1 %v1303_v45  ;;  %v1475_v34 = vmax.f32 %v1411_v29, 0.0 }
 0x41f   :  { %v1248_v28 = vpop.f32.mrf.mxu0 }
 0x420   :  { %v1249_v35 = vadd.f32 %v3154_v22, %v1248_v28 }
 0x422   :  { %v1286_v40 = vmax.f32 %v1249_v35, 0.0 }
 0x423   :  { %v1412_v32 = vpop.f32.mrf.mxu1 }
 0x424   :  { %v1413_v33 = vadd.f32 %v3191_v17, %v1412_v32 }
 0x426   :  { %v1476_v36 = vmax.f32 %v1413_v33, 0.0 }
 0x427   :  { %v1250_v37 = vpop.f32.mrf.mxu0 }
 0x428   :  { %v1502_v38 = vpack.c.bf16 %v1476_v36, %v1475_v34  ;;  %v1251_v39 = vadd.f32 %v3154_v22, %v1250_v37 }
 0x42a   :  { %v1287_v41 = vmax.f32 %v1251_v39, 0.0  ;;  %1616 = vmatmul.bf16.gmra.mxu2 %v1502_v38 }
 0x42b   :  { %v1415_v42 = vpop.f32.mrf.mxu1 }
 0x42c   :  { %v1304_v44 = vpack.c.bf16 %v1287_v41, %v1286_v40  ;;  %v1416_v48 = vadd.f32 %v3191_v17, %v1415_v42 }
 0x42e   :  { %1454 = vmatmul.bf16.gmra.mxu1 %v1304_v44  ;;  %v1477_v51 = vmax.f32 %v1416_v48, 0.0 }
 0x42f   :  { %v1253_v47 = vpop.f32.mrf.mxu0 }
 0x430   :  { %v1254_v52 = vadd.f32 %v3154_v22, %v1253_v47 }
 0x432   :  { %v1288_v57 = vmax.f32 %v1254_v52, 0.0 }
 0x433   :  { %v1417_v49 = vpop.f32.mrf.mxu1 }
 0x434   :  { %v1418_v50 = vadd.f32 %v3191_v17, %v1417_v49 }
 0x436   :  { %v1478_v53 = vmax.f32 %v1418_v50, 0.0 }
 0x437   :  { %v1255_v54 = vpop.f32.mrf.mxu0 }
 0x438   :  { %v1503_v55 = vpack.c.bf16 %v1478_v53, %v1477_v51  ;;  %v1256_v56 = vadd.f32 %v3154_v22, %v1255_v54 }
 0x43a   :  { %v1289_v58 = vmax.f32 %v1256_v56, 0.0  ;;  %1621 = vmatmul.bf16.gmra.mxu2 %v1503_v55 }
 0x43b   :  { %v1420_v59 = vpop.f32.mrf.mxu1 }
 0x43c   :  { %v1305_v60 = vpack.c.bf16 %v1289_v58, %v1288_v57  ;;  %v1421_v61 = vadd.f32 %v3191_v17, %v1420_v59 }
 0x43e   :  { %1459 = vmatmul.bf16.gmra.mxu1 %v1305_v60  ;;  %v1479_v0 = vmax.f32 %v1421_v61, 0.0 }
 0x443   :  { %v1422_v62 = vpop.f32.mrf.mxu1 }
 0x444   :  { %v1423_v63 = vadd.f32 %v3191_v17, %v1422_v62 }
 0x446   :  { %v1480_v1 = vmax.f32 %v1423_v63, 0.0 }
 0x448   :  { %v1504_v2 = vpack.c.bf16 %v1480_v1, %v1479_v0 }
 0x44a   :  { %1626 = vmatmul.bf16.gmra.mxu2 %v1504_v2 }
 0x44b   :  { %v1425_v3 = vpop.f32.mrf.mxu1 }
 0x44c   :  { %v1426_v4 = vadd.f32 %v3191_v17, %v1425_v3 }
 0x44e   :  { %v1481_v6 = vmax.f32 %v1426_v4, 0.0 }
 0x453   :  { %v1427_v5 = vpop.f32.mrf.mxu1 }
 0x454   :  { %v1428_v22 = vadd.f32 %v3191_v17, %v1427_v5 }
 0x456   :  { %v1482_v8 = vmax.f32 %v1428_v22, 0.0 }
 0x458   :  { %v1505_v9 = vpack.c.bf16 %v1482_v8, %v1481_v6 }
 0x45a   :  { %1631 = vmatmul.bf16.gmra.mxu2 %v1505_v9 }
 0x45b   :  { %v1430_v10 = vpop.f32.mrf.mxu1 }
 0x45c   :  { %v1431_v27 = vadd.f32 %v3191_v17, %v1430_v10 }
 0x45d   :  { %v1592_v11 = vpop.f32.mrf.mxu2 }
 0x45e   :  { %v1593_v14 = vadd.f32 %v3228_v12, %v1592_v11  ;;  %v1483_v16 = vmax.f32 %v1431_v27, 0.0 }
 0x460   :  { %v1672_v7 = vmax.f32 %v1593_v14, 0.0 }
 0x463   :  { %v1432_v13 = vpop.f32.mrf.mxu1 }
 0x464   :  { %v1433_v31 = vadd.f32 %v3191_v17, %v1432_v13 }
 0x465   :  { %v1594_v15 = vpop.f32.mrf.mxu2 }
 0x466   :  { %v1484_v30 = vmax.f32 %v1433_v31, 0.0  ;;  %v1595_v18 = vadd.f32 %v3228_v12, %v1594_v15 }
 0x468   :  { %v1506_v19 = vpack.c.bf16 %v1484_v30, %v1483_v16  ;;  %v1673_v20 = vmax.f32 %v1595_v18, 0.0 }
 0x46a   :  { %v1704_v21 = vpack.c.bf16 %v1673_v20, %v1672_v7  ;;  %1636 = vmatmul.bf16.gmra.mxu2 %v1506_v19 }
 0x46b   :  { %v1435_v23 = vpop.f32.mrf.mxu1 }
 0x46c   :  { %1798 = vmatmul.bf16.vlgmr.msrb.gmra.mxu3 %v1704_v21  ;;  %v1436_v24 = vadd.f32 %v3191_v17, %v1435_v23 }
 0x46d   :  { %v1597_v43 = vpop.f32.mrf.mxu2 }
 0x46e   :  { %v1598_v26 = vadd.f32 %v3228_v12, %v1597_v43  ;;  %v1485_v29 = vmax.f32 %v1436_v24, 0.0 }
 0x470   :  { %v1674_v34 = vmax.f32 %v1598_v26, 0.0 }
 0x473   :  { %v1437_v25 = vpop.f32.mrf.mxu1 }
 0x474   :  { %v1438_v45 = vadd.f32 %v3191_v17, %v1437_v25 }
 0x475   :  { %v1599_v28 = vpop.f32.mrf.mxu2 }
 0x476   :  { %v1486_v32 = vmax.f32 %v1438_v45, 0.0  ;;  %v1600_v33 = vadd.f32 %v3228_v12, %v1599_v28 }
 0x478   :  { %v1507_v35 = vpack.c.bf16 %v1486_v32, %v1485_v29  ;;  %v1675_v36 = vmax.f32 %v1600_v33, 0.0 }
 0x47a   :  { %1641 = vmatmul.bf16.gmra.mxu2 %v1507_v35  ;;  %v1705_v37 = vpack.c.bf16 %v1675_v36, %v1674_v34 }
 0x47b   :  { %v1440_v38 = vpop.f32.mrf.mxu1 }
 0x47c   :  { %1803 = vmatmul.bf16.gmra.mxu3 %v1705_v37  ;;  %v1441_v40 = vadd.f32 %v3191_v17, %v1440_v38 }
 0x47d   :  { %v1602_v39 = vpop.f32.mrf.mxu2 }
 0x47e   :  { %v1603_v42 = vadd.f32 %v3228_v12, %v1602_v39  ;;  %v1487_v47 = vmax.f32 %v1441_v40, 0.0 }
 0x480   :  { %v1676_v50 = vmax.f32 %v1603_v42, 0.0 }
 0x483   :  { %v1442_v41 = vpop.f32.mrf.mxu1 }
 0x484   :  { %v1443_v44 = vadd.f32 %v3191_v17, %v1442_v41 }
 0x485   :  { %v1604_v46 = vpop.f32.mrf.mxu2 }
 0x486   :  { %v1488_v48 = vmax.f32 %v1443_v44, 0.0  ;;  %v1605_v49 = vadd.f32 %v3228_v12, %v1604_v46 }
 0x488   :  { %v1508_v51 = vpack.c.bf16 %v1488_v48, %v1487_v47  ;;  %v1677_v52 = vmax.f32 %v1605_v49, 0.0 }
 0x48a   :  { %1646 = vmatmul.bf16.gmra.mxu2 %v1508_v51  ;;  %v1706_v53 = vpack.c.bf16 %v1677_v52, %v1676_v50 }
 0x48b   :  { %v1445_v54 = vpop.f32.mrf.mxu1 }
 0x48c   :  { %1808 = vmatmul.bf16.gmra.mxu3 %v1706_v53  ;;  %v1446_v56 = vadd.f32 %v3191_v17, %v1445_v54 }
 0x48d   :  { %v1607_v55 = vpop.f32.mrf.mxu2 }
 0x48e   :  { %v1608_v58 = vadd.f32 %v3228_v12, %v1607_v55  ;;  %v1489_v61 = vmax.f32 %v1446_v56, 0.0 }
 0x490   :  { %v1678_v0 = vmax.f32 %v1608_v58, 0.0 }
 0x493   :  { %v1447_v57 = vpop.f32.mrf.mxu1 }
 0x494   :  { %v1448_v59 = vadd.f32 %v3191_v17, %v1447_v57 }
 0x495   :  { %v1609_v60 = vpop.f32.mrf.mxu2 }
 0x496   :  { %v1490_v62 = vmax.f32 %v1448_v59, 0.0  ;;  %v1610_v63 = vadd.f32 %v3228_v12, %v1609_v60 }
 0x498   :  { %v1509_v1 = vpack.c.bf16 %v1490_v62, %v1489_v61  ;;  %v1679_v2 = vmax.f32 %v1610_v63, 0.0  ;;  %v3265_v61 = vld [vmem:[%s3670_s2 + $0x7] ss:$0 sm:$0xff]  ;;  %s2845_s2 = smov [#allocation5]  }
 0x499   :  { %s2235_s14 = sshll.u32 %s2845_s2, 4  ;;  %s2236_s14 = int_to_ptr.vmem [resolvable:$true] %s2235_s14 }
 0x49a   :  { %1651 = vmatmul.bf16.gmra.mxu2 %v1509_v1  ;;  %v1707_v3 = vpack.c.bf16 %v1679_v2, %v1678_v0 }
 0x49b   :  { %v1450_v4 = vpop.f32.mrf.mxu1 }
 0x49c   :  { %1813 = vmatmul.bf16.gmra.mxu3 %v1707_v3  ;;  %v1451_v22 = vadd.f32 %v3191_v17, %v1450_v4 }
 0x49d   :  { %v1612_v5 = vpop.f32.mrf.mxu2 }
 0x49e   :  { %v1613_v8 = vadd.f32 %v3228_v12, %v1612_v5  ;;  %v1491_v11 = vmax.f32 %v1451_v22, 0.0 }
 0x4a0   :  { %v1680_v14 = vmax.f32 %v1613_v8, 0.0 }
 0x4a3   :  { %v1452_v6 = vpop.f32.mrf.mxu1 }
 0x4a4   :  { %v1453_v9 = vadd.f32 %v3191_v17, %v1452_v6 }
 0x4a5   :  { %v1614_v10 = vpop.f32.mrf.mxu2 }
 0x4a6   :  { %v1492_v27 = vmax.f32 %v1453_v9, 0.0  ;;  %v1615_v13 = vadd.f32 %v3228_v12, %v1614_v10 }
 0x4a8   :  { %v1510_v31 = vpack.c.bf16 %v1492_v27, %v1491_v11  ;;  %v1681_v15 = vmax.f32 %v1615_v13, 0.0 }
 0x4aa   :  { %v1708_v16 = vpack.c.bf16 %v1681_v15, %v1680_v14  ;;  %1656 = vmatmul.bf16.gmra.mxu2 %v1510_v31 }
 0x4ab   :  { %v1455_v30 = vpop.f32.mrf.mxu1 }
 0x4ac   :  { %1818 = vmatmul.bf16.gmra.mxu3 %v1708_v16  ;;  %v1456_v7 = vadd.f32 %v3191_v17, %v1455_v30 }
 0x4ad   :  { %v1617_v18 = vpop.f32.mrf.mxu2 }
 0x4ae   :  { %v1618_v20 = vadd.f32 %v3228_v12, %v1617_v18  ;;  %v1493_v43 = vmax.f32 %v1456_v7, 0.0 }
 0x4b0   :  { %v1682_v26 = vmax.f32 %v1618_v20, 0.0 }
 0x4b3   :  { %v1457_v19 = vpop.f32.mrf.mxu1 }
 0x4b4   :  { %v1458_v21 = vadd.f32 %v3191_v17, %v1457_v19 }
 0x4b5   :  { %v1619_v23 = vpop.f32.mrf.mxu2 }
 0x4b6   :  { %v1494_v24 = vmax.f32 %v1458_v21, 0.0  ;;  %v1620_v25 = vadd.f32 %v3228_v12, %v1619_v23 }
 0x4b8   :  { %v1511_v45 = vpack.c.bf16 %v1494_v24, %v1493_v43  ;;  %v1683_v28 = vmax.f32 %v1620_v25, 0.0 }
 0x4ba   :  { %v1709_v29 = vpack.c.bf16 %v1683_v28, %v1682_v26  ;;  %1661 = vmatmul.bf16.gmra.mxu2 %v1511_v45 }
 0x4bb   :  { %v1460_v32 = vpop.f32.mrf.mxu1 }
 0x4bc   :  { %1823 = vmatmul.bf16.gmra.mxu3 %v1709_v29  ;;  %v1461_v34 = vadd.f32 %v3191_v17, %v1460_v32 }
 0x4bd   :  { %v1622_v33 = vpop.f32.mrf.mxu2 }
 0x4be   :  { %v1623_v36 = vadd.f32 %v3228_v12, %v1622_v33  ;;  %v1495_v39 = vmax.f32 %v1461_v34, 0.0 }
 0x4c0   :  { %v1684_v42 = vmax.f32 %v1623_v36, 0.0 }
 0x4c3   :  { %v1462_v35 = vpop.f32.mrf.mxu1 }
 0x4c4   :  { %v1463_v37 = vadd.f32 %v3191_v17, %v1462_v35 }
 0x4c5   :  { %v1624_v38 = vpop.f32.mrf.mxu2 }
 0x4c6   :  { %v1496_v40 = vmax.f32 %v1463_v37, 0.0  ;;  %v1625_v41 = vadd.f32 %v3228_v12, %v1624_v38 }
 0x4c8   :  { %v1512_v44 = vpack.c.bf16 %v1496_v40, %v1495_v39  ;;  %v1685_v46 = vmax.f32 %v1625_v41, 0.0 }
 0x4ca   :  { %v1710_v47 = vpack.c.bf16 %v1685_v46, %v1684_v42  ;;  %1666 = vmatmul.bf16.gmra.mxu2 %v1512_v44 }
 0x4cc   :  { %1828 = vmatmul.bf16.gmra.mxu3 %v1710_v47 }
 0x4cd   :  { %v1627_v48 = vpop.f32.mrf.mxu2 }
 0x4ce   :  { %v1628_v49 = vadd.f32 %v3228_v12, %v1627_v48 }
 0x4d0   :  { %v1686_v52 = vmax.f32 %v1628_v49, 0.0 }
 0x4d5   :  { %v1629_v50 = vpop.f32.mrf.mxu2 }
 0x4d6   :  { %v1630_v51 = vadd.f32 %v3228_v12, %v1629_v50 }
 0x4d8   :  { %v1687_v53 = vmax.f32 %v1630_v51, 0.0 }
 0x4da   :  { %v1711_v17 = vpack.c.bf16 %v1687_v53, %v1686_v52 }
 0x4dc   :  { %1833 = vmatmul.bf16.gmra.mxu3 %v1711_v17 }
 0x4dd   :  { %v1632_v54 = vpop.f32.mrf.mxu2 }
 0x4de   :  { %v1633_v55 = vadd.f32 %v3228_v12, %v1632_v54 }
 0x4e0   :  { %v1688_v58 = vmax.f32 %v1633_v55, 0.0 }
 0x4e5   :  { %v1634_v56 = vpop.f32.mrf.mxu2 }
 0x4e6   :  { %v1635_v57 = vadd.f32 %v3228_v12, %v1634_v56 }
 0x4e8   :  { %v1689_v59 = vmax.f32 %v1635_v57, 0.0 }
 0x4ea   :  { %v1712_v60 = vpack.c.bf16 %v1689_v59, %v1688_v58 }
 0x4ec   :  { %1838 = vmatmul.bf16.gmra.mxu3 %v1712_v60 }
 0x4ed   :  { %v1637_v62 = vpop.f32.mrf.mxu2 }
 0x4ee   :  { %v1638_v2 = vadd.f32 %v3228_v12, %v1637_v62 }
 0x4ef   :  { %v1799_v63 = vpop.f32.mrf.mxu3 }
 0x4f0   :  { %v3268_v0 = vadd.f32 %v3265_v61, %v1799_v63  ;;  %v1690_v22 = vmax.f32 %v1638_v2, 0.0 }
 0x4f2   :  { %v1879_v1 = vmax.f32 %v3268_v0, 0.0 }
 0x4f4   :  { %1911 = vmax.xlane.f32.xlu2 %v1879_v1 }
 0x4f5   :  { %v1639_v3 = vpop.f32.mrf.mxu2 }
 0x4f6   :  { %v1640_v4 = vadd.f32 %v3228_v12, %v1639_v3 }
 0x4f7   :  { %v1801_v5 = vpop.f32.mrf.mxu3 }
 0x4f8   :  { %v1691_v6 = vmax.f32 %v1640_v4, 0.0  ;;  %v3276_v8 = vadd.f32 %v3265_v61, %v1801_v5 }
 0x4fa   :  { %v1713_v9 = vpack.c.bf16 %v1691_v6, %v1690_v22  ;;  %v1880_v10 = vmax.f32 %v3276_v8, 0.0 }
 0x4fc   :  { %1843 = vmatmul.bf16.gmra.mxu3 %v1713_v9  ;;  %1913 = vmax.xlane.f32.xlu0 %v1880_v10 }
 0x4fd   :  { %v1642_v11 = vpop.f32.mrf.mxu2 }
 0x4fe   :  { %v1643_v31 = vadd.f32 %v3228_v12, %v1642_v11 }
 0x4ff   :  { %v1804_v27 = vpop.f32.mrf.mxu3 }
 0x500   :  { %v3282_v13 = vadd.f32 %v3265_v61, %v1804_v27  ;;  %v1692_v18 = vmax.f32 %v1643_v31, 0.0 }
 0x502   :  { %v1881_v14 = vmax.f32 %v3282_v13, 0.0 }
 0x504   :  { %1915 = vmax.xlane.f32.xlu1 %v1881_v14 }
 0x505   :  { %v1644_v15 = vpop.f32.mrf.mxu2 }
 0x506   :  { %v1645_v16 = vadd.f32 %v3228_v12, %v1644_v15 }
 0x507   :  { %v1806_v30 = vpop.f32.mrf.mxu3 }
 0x508   :  { %v1693_v7 = vmax.f32 %v1645_v16, 0.0  ;;  %v3290_v19 = vadd.f32 %v3265_v61, %v1806_v30 }
 0x50a   :  { %v1714_v20 = vpack.c.bf16 %v1693_v7, %v1692_v18  ;;  %v1882_v21 = vmax.f32 %v3290_v19, 0.0 }
 0x50c   :  { %1848 = vmatmul.bf16.gmra.mxu3 %v1714_v20  ;;  %1917 = vmax.xlane.f32.xlu2 %v1882_v21 }
 0x50d   :  { %v1647_v23 = vpop.f32.mrf.mxu2 }
 0x50e   :  { %v1648_v26 = vadd.f32 %v3228_v12, %v1647_v23 }
 0x50f   :  { %v1809_v43 = vpop.f32.mrf.mxu3 }
 0x510   :  { %v3296_v24 = vadd.f32 %v3265_v61, %v1809_v43  ;;  %v1694_v32 = vmax.f32 %v1648_v26, 0.0 }
 0x512   :  { %v1883_v25 = vmax.f32 %v3296_v24, 0.0 }
 0x514   :  { %1919 = vmax.xlane.f32.xlu2 %v1883_v25 }
 0x515   :  { %v1649_v45 = vpop.f32.mrf.mxu2 }
 0x516   :  { %v1650_v28 = vadd.f32 %v3228_v12, %v1649_v45 }
 0x517   :  { %v1811_v29 = vpop.f32.mrf.mxu3 }
 0x518   :  { %v1695_v33 = vmax.f32 %v1650_v28, 0.0  ;;  %v3304_v34 = vadd.f32 %v3265_v61, %v1811_v29 }
 0x51a   :  { %v1715_v35 = vpack.c.bf16 %v1695_v33, %v1694_v32  ;;  %v1884_v36 = vmax.f32 %v3304_v34, 0.0 }
 0x51c   :  { %1853 = vmatmul.bf16.gmra.mxu3 %v1715_v35  ;;  %1921 = vmax.xlane.f32.xlu0 %v1884_v36 }
 0x51d   :  { %v1652_v37 = vpop.f32.mrf.mxu2 }
 0x51e   :  { %v1653_v41 = vadd.f32 %v3228_v12, %v1652_v37 }
 0x51f   :  { %v1814_v38 = vpop.f32.mrf.mxu3 }
 0x520   :  { %v3310_v39 = vadd.f32 %v3265_v61, %v1814_v38  ;;  %v1696_v47 = vmax.f32 %v1653_v41, 0.0 }
 0x522   :  { %v1885_v40 = vmax.f32 %v3310_v39, 0.0 }
 0x524   :  { %1923 = vmax.xlane.f32.xlu1 %v1885_v40 }
 0x525   :  { %v1654_v42 = vpop.f32.mrf.mxu2 }
 0x526   :  { %v1655_v44 = vadd.f32 %v3228_v12, %v1654_v42 }
 0x527   :  { %v1816_v46 = vpop.f32.mrf.mxu3 }
 0x528   :  { %v1697_v48 = vmax.f32 %v1655_v44, 0.0  ;;  %v3318_v49 = vadd.f32 %v3265_v61, %v1816_v46 }
 0x52a   :  { %v1716_v50 = vpack.c.bf16 %v1697_v48, %v1696_v47  ;;  %v1886_v51 = vmax.f32 %v3318_v49, 0.0 }
 0x52c   :  { %1858 = vmatmul.bf16.gmra.mxu3 %v1716_v50  ;;  %1925 = vmax.xlane.f32.xlu2 %v1886_v51 }
 0x52d   :  { %v1657_v52 = vpop.f32.mrf.mxu2 }
 0x52e   :  { %v1658_v55 = vadd.f32 %v3228_v12, %v1657_v52 }
 0x52f   :  { %v1819_v53 = vpop.f32.mrf.mxu3 }
 0x530   :  { %v3324_v17 = vadd.f32 %v3265_v61, %v1819_v53  ;;  %v1698_v59 = vmax.f32 %v1658_v55, 0.0 }
 0x532   :  { %v1887_v54 = vmax.f32 %v3324_v17, 0.0 }
 0x534   :  { %1927 = vmax.xlane.f32.xlu0 %v1887_v54 }
 0x535   :  { %v1659_v56 = vpop.f32.mrf.mxu2 }
 0x536   :  { %v1660_v57 = vadd.f32 %v3228_v12, %v1659_v56 }
 0x537   :  { %v1821_v58 = vpop.f32.mrf.mxu3 }
 0x538   :  { %v1699_v60 = vmax.f32 %v1660_v57, 0.0  ;;  %v3332_v62 = vadd.f32 %v3265_v61, %v1821_v58 }
 0x53a   :  { %v1717_v63 = vpack.c.bf16 %v1699_v60, %v1698_v59  ;;  %v1888_v2 = vmax.f32 %v3332_v62, 0.0 }
 0x53c   :  { %1863 = vmatmul.bf16.gmra.mxu3 %v1717_v63  ;;  %1929 = vmax.xlane.f32.xlu1 %v1888_v2 }
 0x53d   :  { %v1662_v3 = vpop.f32.mrf.mxu2 }
 0x53e   :  { %v1663_v6 = vadd.f32 %v3228_v12, %v1662_v3 }
 0x53f   :  { %v1824_v4 = vpop.f32.mrf.mxu3 }
 0x540   :  { %v3338_v5 = vadd.f32 %v3265_v61, %v1824_v4  ;;  %v1700_v31 = vmax.f32 %v1663_v6, 0.0 }
 0x542   :  { %v1889_v22 = vmax.f32 %v3338_v5, 0.0 }
 0x544   :  { %1931 = vmax.xlane.f32.xlu2 %v1889_v22 }
 0x545   :  { %v1664_v9 = vpop.f32.mrf.mxu2 }
 0x546   :  { %v1665_v11 = vadd.f32 %v3228_v12, %v1664_v9 }
 0x547   :  { %v1826_v27 = vpop.f32.mrf.mxu3 }
 0x548   :  { %v1701_v15 = vmax.f32 %v1665_v11, 0.0  ;;  %v3346_v16 = vadd.f32 %v3265_v61, %v1826_v27 }
 0x54a   :  { %v1718_v30 = vpack.c.bf16 %v1701_v15, %v1700_v31  ;;  %v1890_v18 = vmax.f32 %v3346_v16, 0.0 }
 0x54c   :  { %1868 = vmatmul.bf16.gmra.mxu3 %v1718_v30  ;;  %1933 = vmax.xlane.f32.xlu0 %v1890_v18 }
 0x54d   :  { %v1667_v7 = vpop.f32.mrf.mxu2 }
 0x54e   :  { %v1668_v26 = vadd.f32 %v3228_v12, %v1667_v7 }
 0x54f   :  { %v1829_v20 = vpop.f32.mrf.mxu3 }
 0x550   :  { %v3352_v23 = vadd.f32 %v3265_v61, %v1829_v20  ;;  %v1702_v32 = vmax.f32 %v1668_v26, 0.0 }
 0x552   :  { %v1891_v43 = vmax.f32 %v3352_v23, 0.0 }
 0x554   :  { %1935 = vmax.xlane.f32.xlu1 %v1891_v43 }
 0x555   :  { %v1669_v45 = vpop.f32.mrf.mxu2 }
 0x556   :  { %v1670_v28 = vadd.f32 %v3228_v12, %v1669_v45 }
 0x557   :  { %v1831_v29 = vpop.f32.mrf.mxu3 }
 0x558   :  { %v1703_v33 = vmax.f32 %v1670_v28, 0.0  ;;  %v3360_v35 = vadd.f32 %v3265_v61, %v1831_v29 }
 0x55a   :  { %v1719_v37 = vpack.c.bf16 %v1703_v33, %v1702_v32  ;;  %v1892_v38 = vmax.f32 %v3360_v35, 0.0 }
 0x55c   :  { %1937 = vmax.xlane.f32.xlu2 %v1892_v38  ;;  %1873 = vmatmul.bf16.gmra.mxu3 %v1719_v37 }
 0x55f   :  { %v1834_v41 = vpop.f32.mrf.mxu3 }
 0x560   :  { %v3366_v42 = vadd.f32 %v3265_v61, %v1834_v41 }
 0x562   :  { %v1893_v44 = vmax.f32 %v3366_v42, 0.0 }
 0x564   :  { %1939 = vmax.xlane.f32.xlu0 %v1893_v44 }
 0x567   :  { %v1836_v12 = vpop.f32.mrf.mxu3  ;;  %v1912_v46 = vpop.xlane.xlu2 %1911 }
 0x568   :  { %v3372_v47 = vadd.f32 %v3265_v61, %v1836_v12  ;;  %v1975_v48 = vsub.f32 %v1879_v1, %v1912_v46 }
 0x56a   :  { %v1894_v50 = vmax.f32 %v3372_v47, 0.0  ;;  %v2007_v52 = vmul.f32 1.442695, %v1975_v48 }
 0x56c   :  { %2660 = vpow2.f32 %v2007_v52  ;;  %1941 = vmax.xlane.f32.xlu1 %v1894_v50 }
 0x56f   :  { %v1839_v53 = vpop.f32.mrf.mxu3  ;;  %v1914_v55 = vpop.xlane.xlu0 %1913 }
 0x570   :  { %v3380_v56 = vadd.f32 %v3265_v61, %v1839_v53  ;;  %v1976_v57 = vsub.f32 %v1880_v10, %v1914_v55 }
 0x572   :  { %v3384_v58 = vpop.eup %2660  ;;  %v1895_v0 = vmax.f32 %v3380_v56, 0.0  ;;  %v2009_v1 = vmul.f32 1.442695, %v1976_v57 }
 0x573   :  { %2071 = vadd.xlane.f32.xlu0 %v3384_v58 }
 0x574   :  { %2662 = vpow2.f32 %v2009_v1  ;;  %1943 = vmax.xlane.f32.xlu2 %v1895_v0 }
 0x577   :  { %v1841_v59 = vpop.f32.mrf.mxu3  ;;  %v1916_v60 = vpop.xlane.xlu1 %1915 }
 0x578   :  { %v3391_v63 = vadd.f32 %v3265_v61, %v1841_v59  ;;  %v1977_v8 = vsub.f32 %v1881_v14, %v1916_v60 }
 0x57a   :  { %v3395_v10 = vpop.eup %2662  ;;  %v1896_v3 = vmax.f32 %v3391_v63, 0.0  ;;  %v2011_v4 = vmul.f32 1.442695, %v1977_v8 }
 0x57b   :  { %2073 = vadd.xlane.f32.xlu1 %v3395_v10 }
 0x57c   :  { %2664 = vpow2.f32 %v2011_v4  ;;  %1945 = vmax.xlane.f32.xlu0 %v1896_v3 }
 0x57f   :  { %v1844_v6 = vpop.f32.mrf.mxu3  ;;  %v1918_v9 = vpop.xlane.xlu2 %1917 }
 0x580   :  { %v3402_v11 = vadd.f32 %v3265_v61, %v1844_v6  ;;  %v1978_v13 = vsub.f32 %v1882_v21, %v1918_v9 }
 0x582   :  { %v3406_v14 = vpop.eup %2664  ;;  %v1897_v27 = vmax.f32 %v3402_v11, 0.0  ;;  %v2013_v31 = vmul.f32 1.442695, %v1978_v13 }
 0x583   :  { %2075 = vadd.xlane.f32.xlu2 %v3406_v14 }
 0x584   :  { %2666 = vpow2.f32 %v2013_v31  ;;  %1947 = vmax.xlane.f32.xlu1 %v1897_v27 }
 0x587   :  { %v1846_v15 = vpop.f32.mrf.mxu3  ;;  %v1920_v30 = vpop.xlane.xlu2 %1919 }
 0x588   :  { %v3413_v7 = vadd.f32 %v3265_v61, %v1846_v15  ;;  %v1979_v19 = vsub.f32 %v1883_v25, %v1920_v30 }
 0x58a   :  { %v3417_v21 = vpop.eup %2666  ;;  %v1898_v20 = vmax.f32 %v3413_v7, 0.0  ;;  %v2015_v26 = vmul.f32 1.442695, %v1979_v19 }
 0x58b   :  { %2077 = vadd.xlane.f32.xlu0 %v3417_v21 }
 0x58c   :  { %2668 = vpow2.f32 %v2015_v26  ;;  %1949 = vmax.xlane.f32.xlu2 %v1898_v20 }
 0x58f   :  { %v1849_v45 = vpop.f32.mrf.mxu3  ;;  %v1922_v28 = vpop.xlane.xlu0 %1921 }
 0x590   :  { %v3424_v29 = vadd.f32 %v3265_v61, %v1849_v45  ;;  %v1980_v24 = vsub.f32 %v1884_v36, %v1922_v28 }
 0x592   :  { %v3428_v25 = vpop.eup %2668  ;;  %v1899_v32 = vmax.f32 %v3424_v29, 0.0  ;;  %v2017_v33 = vmul.f32 1.442695, %v1980_v24 }
 0x593   :  { %2079 = vadd.xlane.f32.xlu1 %v3428_v25 }
 0x594   :  { %2670 = vpow2.f32 %v2017_v33  ;;  %1951 = vmax.xlane.f32.xlu0 %v1899_v32 }
 0x597   :  { %v1851_v37 = vpop.f32.mrf.mxu3  ;;  %v1924_v41 = vpop.xlane.xlu1 %1923 }
 0x598   :  { %v3435_v12 = vadd.f32 %v3265_v61, %v1851_v37  ;;  %v1981_v34 = vsub.f32 %v1885_v40, %v1924_v41 }
 0x59a   :  { %v3439_v36 = vpop.eup %2670  ;;  %v1900_v46 = vmax.f32 %v3435_v12, 0.0  ;;  %v2019_v48 = vmul.f32 1.442695, %v1981_v34 }
 0x59b   :  { %2081 = vadd.xlane.f32.xlu2 %v3439_v36 }
 0x59c   :  { %2672 = vpow2.f32 %v2019_v48  ;;  %1953 = vmax.xlane.f32.xlu1 %v1900_v46 }
 0x59f   :  { %v1854_v52 = vpop.f32.mrf.mxu3  ;;  %v1926_v53 = vpop.xlane.xlu2 %1925 }
 0x5a0   :  { %v3446_v55 = vadd.f32 %v3265_v61, %v1854_v52  ;;  %v1982_v39 = vsub.f32 %v1886_v51, %v1926_v53 }
 0x5a2   :  { %v3450_v40 = vpop.eup %2672  ;;  %v1901_v57 = vmax.f32 %v3446_v55, 0.0  ;;  %v2021_v1 = vmul.f32 1.442695, %v1982_v39 }
 0x5a3   :  { %2083 = vadd.xlane.f32.xlu0 %v3450_v40 }
 0x5a4   :  { %2674 = vpow2.f32 %v2021_v1  ;;  %1955 = vmax.xlane.f32.xlu2 %v1901_v57 }
 0x5a7   :  { %v1856_v59 = vpop.f32.mrf.mxu3  ;;  %v1928_v60 = vpop.xlane.xlu0 %1927 }
 0x5a8   :  { %v3457_v8 = vadd.f32 %v3265_v61, %v1856_v59  ;;  %v1983_v49 = vsub.f32 %v1887_v54, %v1928_v60 }
 0x5aa   :  { %v3461_v51 = vpop.eup %2674  ;;  %v1902_v4 = vmax.f32 %v3457_v8, 0.0  ;;  %v2023_v6 = vmul.f32 1.442695, %v1983_v49 }
 0x5ab   :  { %2085 = vadd.xlane.f32.xlu1 %v3461_v51 }
 0x5ac   :  { %2676 = vpow2.f32 %v2023_v6  ;;  %1957 = vmax.xlane.f32.xlu0 %v1902_v4 }
 0x5af   :  { %v1859_v9 = vpop.f32.mrf.mxu3  ;;  %v1930_v13 = vpop.xlane.xlu1 %1929 }
 0x5b0   :  { %v3468_v31 = vadd.f32 %v3265_v61, %v1859_v9  ;;  %v1984_v17 = vsub.f32 %v1888_v2, %v1930_v13 }
 0x5b2   :  { %v3472_v54 = vpop.eup %2676  ;;  %v1903_v15 = vmax.f32 %v3468_v31, 0.0  ;;  %v2025_v30 = vmul.f32 1.442695, %v1984_v17 }
 0x5b3   :  { %2087 = vadd.xlane.f32.xlu2 %v3472_v54 }
 0x5b4   :  { %2678 = vpow2.f32 %v2025_v30  ;;  %1959 = vmax.xlane.f32.xlu1 %v1903_v15 }
 0x5b7   :  { %v1861_v19 = vpop.f32.mrf.mxu3  ;;  %v1932_v26 = vpop.xlane.xlu2 %1931 }
 0x5b8   :  { %v3479_v45 = vadd.f32 %v3265_v61, %v1861_v19  ;;  %v1985_v62 = vsub.f32 %v1889_v22, %v1932_v26 }
 0x5ba   :  { %v3483_v2 = vpop.eup %2678  ;;  %v1904_v28 = vmax.f32 %v3479_v45, 0.0  ;;  %v2027_v24 = vmul.f32 1.442695, %v1985_v62 }
 0x5bb   :  { %2089 = vadd.xlane.f32.xlu0 %v3483_v2 }
 0x5bc   :  { %2680 = vpow2.f32 %v2027_v24  ;;  %1961 = vmax.xlane.f32.xlu2 %v1904_v28 }
 0x5bf   :  { %v1864_v33 = vpop.f32.mrf.mxu3  ;;  %v1934_v60 = vpop.xlane.xlu0 %1933 }
 0x5c0   :  { %v3490_v37 = vadd.f32 %v3265_v61, %v1864_v33  ;;  %v1986_v35 = vsub.f32 %v1890_v18, %v1934_v60 }
 0x5c2   :  { %v3492_v41 = vpop.eup %2680  ;;  %v1905_v5 = vmax.f32 %v3490_v37, 0.0 }
 0x5c3   :  { %2091 = vadd.xlane.f32.xlu1 %v3492_v41 }
 0x5c4   :  { %1963 = vmax.xlane.f32.xlu0 %v1905_v5 }
 0x5c7   :  { %v1866_v22 = vpop.f32.mrf.mxu3  ;;  %v1936_v39 = vpop.xlane.xlu1 %1935 }
 0x5c8   :  { %v3499_v34 = vadd.f32 %v3265_v61, %v1866_v22  ;;  %v1987_v59 = vsub.f32 %v1891_v43, %v1936_v39 }
 0x5ca   :  { %v1906_v48 = vmax.f32 %v3499_v34, 0.0  ;;  %v2031_v9 = vmul.f32 1.442695, %v1987_v59 }
 0x5cc   :  { %1965 = vmax.xlane.f32.xlu1 %v1906_v48  ;;  %2682 = vpow2.f32 %v2031_v9 }
 0x5cf   :  { %v1869_v52 = vpop.f32.mrf.mxu3  ;;  %v1938_v17 = vpop.xlane.xlu2 %1937 }
 0x5d0   :  { %v3505_v53 = vadd.f32 %v3265_v61, %v1869_v52  ;;  %v1988_v30 = vsub.f32 %v1892_v38, %v1938_v17 }
 0x5d2   :  { %v1907_v1 = vmax.f32 %v3505_v53, 0.0  ;;  %v2033_v24 = vmul.f32 1.442695, %v1988_v30  ;;  %v3526_v52 = vpop.eup %2682 }
 0x5d4   :  { %1967 = vmax.xlane.f32.xlu2 %v1907_v1 }
 0x5d7   :  { %v1871_v49 = vpop.f32.mrf.mxu3  ;;  %v1940_v19 = vpop.xlane.xlu0 %1939 }
 0x5d8   :  { %v3513_v6 = vadd.f32 %v3265_v61, %v1871_v49  ;;  %v2029_v49 = vmul.f32 1.442695, %v1986_v35 }
 0x5da   :  { %v1908_v13 = vmax.f32 %v3513_v6, 0.0 }
 0x5dc   :  { %1969 = vmax.xlane.f32.xlu0 %v1908_v13 }
 0x5df   :  { %v1942_v26 = vpop.xlane.xlu1 %1941  ;;  %v1874_v23 = vpop.f32.mrf.mxu3 }
 0x5e0   :  { %v1990_v43 = vsub.f32 %v1894_v50, %v1942_v26  ;;  %v3523_v62 = vadd.f32 %v3265_v61, %v1874_v23 }
 0x5e2   :  { %v2037_v33 = vmul.f32 1.442695, %v1990_v43  ;;  %v1909_v22 = vmax.f32 %v3523_v62, 0.0 }
 0x5e4   :  { %2684 = vpow2.f32 %v2037_v33  ;;  %2095 = vadd.xlane.f32.xlu0 %v3526_v52  ;;  %1971 = vmax.xlane.f32.xlu1 %v1909_v22 }
 0x5e5   :  { %2686 = vpow2.f32 %v2033_v24 }
 0x5e6   :  { %v2072_v38 = vpop.xlane.xlu0 %2071 }
 0x5e7   :  { %2688 = vrcp.f32 %v2072_v38  ;;  %v1944_v47 = vpop.xlane.xlu2 %1943  ;;  %v1876_v50 = vpop.f32.mrf.mxu3 }
 0x5e8   :  { %v1991_v39 = vsub.f32 %v1895_v0, %v1944_v47  ;;  %v3536_v59 = vadd.f32 %v3265_v61, %v1876_v50  ;;  %v1989_v61 = vsub.f32 %v1893_v44, %v1940_v19 }
 0x5ea   :  { %v3538_v9 = vpop.eup %2684  ;;  %v2039_v17 = vmul.f32 1.442695, %v1991_v39  ;;  %v1910_v30 = vmax.f32 %v3536_v59, 0.0  ;;  %v2035_v0 = vmul.f32 1.442695, %v1989_v61 }
 0x5eb   :  { %v3541_v26 = vpop.eup %2686 }
 0x5ec   :  { %2690 = vpow2.f32 %v2039_v17  ;;  %2101 = vadd.xlane.f32.xlu0 %v3538_v9  ;;  %1973 = vmax.xlane.f32.xlu2 %v1910_v30 }
 0x5ed   :  { %v2689_v16 = vpop.eup %2688  ;;  %2692 = vpow2.f32 %v2029_v49  ;;  %2097 = vadd.xlane.f32.xlu1 %v3541_v26 }
 0x5ee   :  { %v2167_v18 = vmul.f32 %v2689_v16, %v3384_v58  ;;  %v2074_v56 = vpop.xlane.xlu1 %2073 }
 0x5ef   :  { %2694 = vrcp.f32 %v2074_v56  ;;  %v1946_v23 = vpop.xlane.xlu0 %1945 }
 0x5f0   :  { %2199 = vst [vmem:[#allocation5] sm:$0xff] %v2167_v18  ;;  %2696 = vpow2.f32 %v2035_v0  ;;  %v1992_v42 = vsub.f32 %v1896_v3, %v1946_v23 }
 0x5f2   :  { %v3550_v60 = vpop.eup %2690  ;;  %v2041_v35 = vmul.f32 1.442695, %v1992_v42 }
 0x5f3   :  { %v3552_v43 = vpop.eup %2692 }
 0x5f4   :  { %2093 = vadd.xlane.f32.xlu2 %v3552_v43 }
 0x5f5   :  { %v2695_v24 = vpop.eup %2694  ;;  %2103 = vadd.xlane.f32.xlu1 %v3550_v60 }
 0x5f6   :  { %v2168_v44 = vmul.f32 %v2695_v24, %v3395_v10  ;;  %v2076_v58 = vpop.xlane.xlu2 %2075  ;;  %v3561_v47 = vpop.eup %2696 }
 0x5f7   :  { %2698 = vrcp.f32 %v2076_v58  ;;  %v1948_v19 = vpop.xlane.xlu1 %1947 }
 0x5f8   :  { %2200 = vst [vmem:[#allocation5 + $0x8] sm:$0xff] %v2168_v44  ;;  %v1993_v33 = vsub.f32 %v1897_v27, %v1948_v19 }
 0x5fa   :  { %v2043_v38 = vmul.f32 1.442695, %v1993_v33 }
 0x5fc   :  { %2700 = vpow2.f32 %v2043_v38  ;;  %2099 = vadd.xlane.f32.xlu2 %v3561_v47 }
 0x5fd   :  { %v2699_v63 = vpop.eup %2698  ;;  %2702 = vpow2.f32 %v2041_v35 }
 0x5fe   :  { %v2169_v3 = vmul.f32 %v2699_v63, %v3406_v14  ;;  %v2078_v50 = vpop.xlane.xlu0 %2077 }
 0x5ff   :  { %2704 = vrcp.f32 %v2078_v50  ;;  %v1950_v10 = vpop.xlane.xlu2 %1949 }
 0x600   :  { %2201 = vst [vmem:[#allocation5 + $0x10] sm:$0xff] %v2169_v3  ;;  %v1994_v39 = vsub.f32 %v1898_v20, %v1950_v10 }
 0x602   :  { %v3567_v11 = vpop.eup %2700  ;;  %v2045_v27 = vmul.f32 1.442695, %v1994_v39 }
 0x603   :  { %v3569_v49 = vpop.eup %2702  ;;  %2107 = vadd.xlane.f32.xlu0 %v3567_v11 }
 0x604   :  { %2706 = vpow2.f32 %v2045_v27  ;;  %2105 = vadd.xlane.f32.xlu2 %v3569_v49 }
 0x605   :  { %v2705_v17 = vpop.eup %2704 }
 0x606   :  { %v2170_v14 = vmul.f32 %v2705_v17, %v3417_v21  ;;  %v2080_v16 = vpop.xlane.xlu1 %2079 }
 0x607   :  { %2708 = vrcp.f32 %v2080_v16  ;;  %v1952_v61 = vpop.xlane.xlu0 %1951 }
 0x608   :  { %2202 = vst [vmem:[#allocation5 + $0x18] sm:$0xff] %v2170_v14  ;;  %v1995_v7 = vsub.f32 %v1899_v32, %v1952_v61 }
 0x60a   :  { %v3576_v20 = vpop.eup %2706  ;;  %v2047_v18 = vmul.f32 1.442695, %v1995_v7 }
 0x60b   :  { %2109 = vadd.xlane.f32.xlu1 %v3576_v20 }
 0x60c   :  { %2710 = vpow2.f32 %v2047_v18 }
 0x60d   :  { %v2709_v56 = vpop.eup %2708 }
 0x60e   :  { %v2171_v0 = vmul.f32 %v2709_v56, %v3428_v25  ;;  %v2082_v23 = vpop.xlane.xlu2 %2081 }
 0x60f   :  { %2712 = vrcp.f32 %v2082_v23  ;;  %v1954_v24 = vpop.xlane.xlu1 %1953 }
 0x610   :  { %2203 = vst [vmem:[#allocation5 + $0x20] sm:$0xff] %v2171_v0  ;;  %v1996_v21 = vsub.f32 %v1900_v46, %v1954_v24 }
 0x612   :  { %v3582_v42 = vpop.eup %2710  ;;  %v2049_v29 = vmul.f32 1.442695, %v1996_v21 }
 0x613   :  { %2111 = vadd.xlane.f32.xlu2 %v3582_v42 }
 0x614   :  { %2714 = vpow2.f32 %v2049_v29 }
 0x615   :  { %v2713_v32 = vpop.eup %2712 }
 0x616   :  { %v2172_v44 = vmul.f32 %v2713_v32, %v3439_v36  ;;  %v2084_v58 = vpop.xlane.xlu0 %2083 }
 0x617   :  { %2716 = vrcp.f32 %v2084_v58  ;;  %v1956_v19 = vpop.xlane.xlu2 %1955 }
 0x618   :  { %2204 = vst [vmem:[#allocation5 + $0x28] sm:$0xff] %v2172_v44  ;;  %v1997_v25 = vsub.f32 %v1901_v57, %v1956_v19 }
 0x61a   :  { %v3588_v33 = vpop.eup %2714  ;;  %v2051_v12 = vmul.f32 1.442695, %v1997_v25 }
 0x61b   :  { %2113 = vadd.xlane.f32.xlu0 %v3588_v33 }
 0x61c   :  { %2718 = vpow2.f32 %v2051_v12 }
 0x61d   :  { %v2717_v46 = vpop.eup %2716 }
 0x61e   :  { %v2173_v35 = vmul.f32 %v2717_v46, %v3450_v40  ;;  %v2086_v38 = vpop.xlane.xlu1 %2085 }
 0x61f   :  { %2720 = vrcp.f32 %v2086_v38  ;;  %v1958_v63 = vpop.xlane.xlu0 %1957 }
 0x620   :  { %2205 = vst [vmem:[#allocation5 + $0x30] sm:$0xff] %v2173_v35  ;;  %v1998_v36 = vsub.f32 %v1902_v4, %v1958_v63 }
 0x622   :  { %v3594_v3 = vpop.eup %2718  ;;  %v2053_v55 = vmul.f32 1.442695, %v1998_v36 }
 0x623   :  { %2115 = vadd.xlane.f32.xlu1 %v3594_v3 }
 0x624   :  { %2722 = vpow2.f32 %v2053_v55 }
 0x625   :  { %v2721_v57 = vpop.eup %2720 }
 0x626   :  { %v2174_v50 = vmul.f32 %v2721_v57, %v3461_v51  ;;  %v2088_v10 = vpop.xlane.xlu2 %2087 }
 0x627   :  { %2724 = vrcp.f32 %v2088_v10  ;;  %v1960_v39 = vpop.xlane.xlu1 %1959 }
 0x628   :  { %2206 = vst [vmem:[#allocation5 + $0x38] sm:$0xff] %v2174_v50  ;;  %v1999_v40 = vsub.f32 %v1903_v15, %v1960_v39 }
 0x62a   :  { %v3600_v27 = vpop.eup %2722  ;;  %v2055_v8 = vmul.f32 1.442695, %v1999_v40 }
 0x62b   :  { %2117 = vadd.xlane.f32.xlu2 %v3600_v27 }
 0x62c   :  { %2726 = vpow2.f32 %v2055_v8 }
 0x62d   :  { %v2725_v4 = vpop.eup %2724 }
 0x62e   :  { %v2175_v17 = vmul.f32 %v2725_v4, %v3472_v54  ;;  %v2090_v14 = vpop.xlane.xlu0 %2089 }
 0x62f   :  { %2728 = vrcp.f32 %v2090_v14  ;;  %v1962_v16 = vpop.xlane.xlu2 %1961 }
 0x630   :  { %2207 = vst [vmem:[#allocation5 + $0x40] sm:$0xff] %v2175_v17  ;;  %v2000_v51 = vsub.f32 %v1904_v28, %v1962_v16 }
 0x632   :  { %v3606_v61 = vpop.eup %2726  ;;  %v2057_v31 = vmul.f32 1.442695, %v2000_v51 }
 0x633   :  { %2119 = vadd.xlane.f32.xlu0 %v3606_v61 }
 0x634   :  { %2730 = vpow2.f32 %v2057_v31 }
 0x635   :  { %v2729_v15 = vpop.eup %2728 }
 0x636   :  { %v2176_v7 = vmul.f32 %v2729_v15, %v3483_v2  ;;  %v2092_v18 = vpop.xlane.xlu1 %2091 }
 0x637   :  { %2732 = vrcp.f32 %v2092_v18  ;;  %v1964_v56 = vpop.xlane.xlu0 %1963 }
 0x638   :  { %2208 = vst [vmem:[#allocation5 + $0x48] sm:$0xff] %v2176_v7  ;;  %v2001_v54 = vsub.f32 %v1905_v5, %v1964_v56 }
 0x63a   :  { %v3612_v0 = vpop.eup %2730  ;;  %v2059_v45 = vmul.f32 1.442695, %v2001_v54 }
 0x63b   :  { %2121 = vadd.xlane.f32.xlu1 %v3612_v0 }
 0x63c   :  { %2734 = vpow2.f32 %v2059_v45 }
 0x63d   :  { %v2733_v28 = vpop.eup %2732 }
 0x63e   :  { %v2177_v23 = vmul.f32 %v2733_v28, %v3492_v41 }
 0x63f   :  { %v1966_v24 = vpop.xlane.xlu1 %1965 }
 0x640   :  { %2209 = vst [vmem:[#allocation5 + $0x50] sm:$0xff] %v2177_v23  ;;  %v2002_v2 = vsub.f32 %v1906_v48, %v1966_v24 }
 0x642   :  { %v3618_v21 = vpop.eup %2734  ;;  %v2061_v29 = vmul.f32 1.442695, %v2002_v2 }
 0x643   :  { %2123 = vadd.xlane.f32.xlu2 %v3618_v21 }
 0x644   :  { %2736 = vpow2.f32 %v2061_v29 }
 0x647   :  { %v1968_v37 = vpop.xlane.xlu2 %1967 }
 0x648   :  { %v2003_v5 = vsub.f32 %v1907_v1, %v1968_v37 }
 0x64a   :  { %v3623_v32 = vpop.eup %2736  ;;  %v2063_v44 = vmul.f32 1.442695, %v2003_v5 }
 0x64b   :  { %2125 = vadd.xlane.f32.xlu0 %v3623_v32 }
 0x64c   :  { %2738 = vpow2.f32 %v2063_v44 }
 0x64f   :  { %v1970_v41 = vpop.xlane.xlu0 %1969 }
 0x650   :  { %v2004_v34 = vsub.f32 %v1908_v13, %v1970_v41 }
 0x652   :  { %v3628_v48 = vpop.eup %2738  ;;  %v2065_v58 = vmul.f32 1.442695, %v2004_v34 }
 0x653   :  { %2127 = vadd.xlane.f32.xlu1 %v3628_v48 }
 0x654   :  { %2740 = vpow2.f32 %v2065_v58 }
 0x657   :  { %v2096_v19 = vpop.xlane.xlu0 %2095  ;;  %v1972_v25 = vpop.xlane.xlu1 %1971 }
 0x658   :  { %2742 = vrcp.f32 %v2096_v19  ;;  %v2005_v53 = vsub.f32 %v1909_v22, %v1972_v25 }
 0x65a   :  { %v3633_v1 = vpop.eup %2740  ;;  %v2067_v12 = vmul.f32 1.442695, %v2005_v53 }
 0x65b   :  { %2129 = vadd.xlane.f32.xlu2 %v3633_v1 }
 0x65c   :  { %2744 = vpow2.f32 %v2067_v12 }
 0x65e   :  { %v2743_v6 = vpop.eup %2742 }
 0x65f   :  { %v2179_v13 = vmul.f32 %v2743_v6, %v3526_v52  ;;  %v2102_v46 = vpop.xlane.xlu0 %2101  ;;  %v1974_v35 = vpop.xlane.xlu2 %1973 }
 0x660   :  { %2746 = vrcp.f32 %v2102_v46  ;;  %v2006_v38 = vsub.f32 %v1910_v30, %v1974_v35  ;;  %v2098_v63 = vpop.xlane.xlu1 %2097 }
 0x661   :  { %2211 = vst [vmem:[#allocation5 + $0x60] sm:$0xff] %v2179_v13  ;;  %2748 = vrcp.f32 %v2098_v63 }
 0x662   :  { %v3639_v62 = vpop.eup %2744  ;;  %v2069_v22 = vmul.f32 1.442695, %v2006_v38 }
 0x663   :  { %2131 = vadd.xlane.f32.xlu0 %v3639_v62 }
 0x664   :  { %2750 = vpow2.f32 %v2069_v22 }
 0x666   :  { %v2747_v36 = vpop.eup %2746 }
 0x667   :  { %v2749_v55 = vpop.eup %2748  ;;  %v2182_v57 = vmul.f32 %v2747_v36, %v3538_v9  ;;  %v2094_v52 = vpop.xlane.xlu2 %2093 }
 0x668   :  { %v2180_v50 = vmul.f32 %v2749_v55, %v3541_v26  ;;  %2752 = vrcp.f32 %v2094_v52  ;;  %v2104_v10 = vpop.xlane.xlu1 %2103 }
 0x669   :  { %2214 = vst [vmem:[#allocation5 + $0x78] sm:$0xff] %v2182_v57  ;;  %2754 = vrcp.f32 %v2104_v10 }
 0x66a   :  { %v3644_v59 = vpop.eup %2750  ;;  %2212 = vst [vmem:[#allocation5 + $0x68] sm:$0xff] %v2180_v50 }
 0x66b   :  { %2133 = vadd.xlane.f32.xlu1 %v3644_v59 }
 0x66e   :  { %v2753_v30 = vpop.eup %2752 }
 0x66f   :  { %v2755_v39 = vpop.eup %2754  ;;  %v2178_v40 = vmul.f32 %v2753_v30, %v3552_v43  ;;  %v2100_v8 = vpop.xlane.xlu2 %2099 }
 0x670   :  { %v2183_v4 = vmul.f32 %v2755_v39, %v3550_v60  ;;  %2756 = vrcp.f32 %v2100_v8 }
 0x671   :  { %2210 = vst [vmem:[#allocation5 + $0x58] sm:$0xff] %v2178_v40 }
 0x672   :  { %2215 = vst [vmem:[#allocation5 + $0x80] sm:$0xff] %v2183_v4 }
 0x676   :  { %v2757_v9 = vpop.eup %2756  ;;  %v2108_v26 = vpop.xlane.xlu0 %2107 }
 0x677   :  { %v2181_v17 = vmul.f32 %v2757_v9, %v3561_v47  ;;  %2758 = vrcp.f32 %v2108_v26  ;;  %v2106_v14 = vpop.xlane.xlu2 %2105 }
 0x678   :  { %2760 = vrcp.f32 %v2106_v14 }
 0x679   :  { %2213 = vst [vmem:[#allocation5 + $0x70] sm:$0xff] %v2181_v17 }
 0x67d   :  { %v2759_v16 = vpop.eup %2758 }
 0x67e   :  { %v2761_v51 = vpop.eup %2760  ;;  %v2185_v31 = vmul.f32 %v2759_v16, %v3567_v11  ;;  %v2110_v15 = vpop.xlane.xlu1 %2109 }
 0x67f   :  { %v2184_v43 = vmul.f32 %v2761_v51, %v3569_v49  ;;  %2762 = vrcp.f32 %v2110_v15 }
 0x680   :  { %2217 = vst [vmem:[#allocation5 + $0x90] sm:$0xff] %v2185_v31 }
 0x681   :  { %2216 = vst [vmem:[#allocation5 + $0x88] sm:$0xff] %v2184_v43 }
 0x685   :  { %v2763_v60 = vpop.eup %2762 }
 0x686   :  { %v2186_v7 = vmul.f32 %v2763_v60, %v3576_v20  ;;  %v2112_v18 = vpop.xlane.xlu2 %2111 }
 0x687   :  { %2764 = vrcp.f32 %v2112_v18 }
 0x688   :  { %2218 = vst [vmem:[#allocation5 + $0x98] sm:$0xff] %v2186_v7 }
 0x68d   :  { %v2765_v47 = vpop.eup %2764 }
 0x68e   :  { %v2187_v56 = vmul.f32 %v2765_v47, %v3582_v42  ;;  %v2114_v54 = vpop.xlane.xlu0 %2113 }
 0x68f   :  { %2766 = vrcp.f32 %v2114_v54 }
 0x690   :  { %2219 = vst [vmem:[#allocation5 + $0xa0] sm:$0xff] %v2187_v56 }
 0x695   :  { %v2767_v45 = vpop.eup %2766 }
 0x696   :  { %v2188_v11 = vmul.f32 %v2767_v45, %v3588_v33  ;;  %v2116_v28 = vpop.xlane.xlu1 %2115 }
 0x697   :  { %2768 = vrcp.f32 %v2116_v28 }
 0x698   :  { %2220 = vst [vmem:[#allocation5 + $0xa8] sm:$0xff] %v2188_v11 }
 0x69d   :  { %v2769_v49 = vpop.eup %2768 }
 0x69e   :  { %v2189_v23 = vmul.f32 %v2769_v49, %v3594_v3  ;;  %v2118_v24 = vpop.xlane.xlu2 %2117 }
 0x69f   :  { %2770 = vrcp.f32 %v2118_v24 }
 0x6a0   :  { %2221 = vst [vmem:[#allocation5 + $0xb0] sm:$0xff] %v2189_v23 }
 0x6a5   :  { %v2771_v20 = vpop.eup %2770 }
 0x6a6   :  { %v2190_v2 = vmul.f32 %v2771_v20, %v3600_v27  ;;  %v2120_v29 = vpop.xlane.xlu0 %2119 }
 0x6a7   :  { %2772 = vrcp.f32 %v2120_v29 }
 0x6a8   :  { %2222 = vst [vmem:[#allocation5 + $0xb8] sm:$0xff] %v2190_v2 }
 0x6ad   :  { %v2773_v42 = vpop.eup %2772 }
 0x6ae   :  { %v2191_v37 = vmul.f32 %v2773_v42, %v3606_v61  ;;  %v2122_v5 = vpop.xlane.xlu1 %2121 }
 0x6af   :  { %2774 = vrcp.f32 %v2122_v5 }
 0x6b0   :  { %2223 = vst [vmem:[#allocation5 + $0xc0] sm:$0xff] %v2191_v37 }
 0x6b5   :  { %v2775_v33 = vpop.eup %2774 }
 0x6b6   :  { %v2192_v44 = vmul.f32 %v2775_v33, %v3612_v0  ;;  %v2124_v41 = vpop.xlane.xlu2 %2123 }
 0x6b7   :  { %2776 = vrcp.f32 %v2124_v41 }
 0x6b8   :  { %2224 = vst [vmem:[#allocation5 + $0xc8] sm:$0xff] %v2192_v44 }
 0x6bd   :  { %v2777_v3 = vpop.eup %2776 }
 0x6be   :  { %v2193_v34 = vmul.f32 %v2777_v3, %v3618_v21  ;;  %v2126_v58 = vpop.xlane.xlu0 %2125 }
 0x6bf   :  { %2778 = vrcp.f32 %v2126_v58 }
 0x6c0   :  { %2225 = vst [vmem:[#allocation5 + $0xd0] sm:$0xff] %v2193_v34 }
 0x6c5   :  { %v2779_v27 = vpop.eup %2778 }
 0x6c6   :  { %v2194_v19 = vmul.f32 %v2779_v27, %v3623_v32  ;;  %v2128_v25 = vpop.xlane.xlu1 %2127 }
 0x6c7   :  { %2780 = vrcp.f32 %v2128_v25 }
 0x6c8   :  { %2226 = vst [vmem:[#allocation5 + $0xd8] sm:$0xff] %v2194_v19 }
 0x6cd   :  { %v2781_v61 = vpop.eup %2780 }
 0x6ce   :  { %v2195_v53 = vmul.f32 %v2781_v61, %v3628_v48  ;;  %v2130_v12 = vpop.xlane.xlu2 %2129 }
 0x6cf   :  { %2782 = vrcp.f32 %v2130_v12 }
 0x6d0   :  { %2227 = vst [vmem:[#allocation5 + $0xe0] sm:$0xff] %v2195_v53 }
 0x6d5   :  { %v2783_v0 = vpop.eup %2782 }
 0x6d6   :  { %v2196_v6 = vmul.f32 %v2783_v0, %v3633_v1  ;;  %v2132_v13 = vpop.xlane.xlu0 %2131 }
 0x6d7   :  { %2784 = vrcp.f32 %v2132_v13 }
 0x6d8   :  { %2228 = vst [vmem:[#allocation5 + $0xe8] sm:$0xff] %v2196_v6 }
 0x6dd   :  { %v2785_v21 = vpop.eup %2784 }
 0x6de   :  { %v2197_v46 = vmul.f32 %v2785_v21, %v3639_v62  ;;  %v2134_v35 = vpop.xlane.xlu1 %2133 }
 0x6df   :  { %2786 = vrcp.f32 %v2134_v35 }
 0x6e0   :  { %2229 = vst [vmem:[#allocation5 + $0xf0] sm:$0xff] %v2197_v46 }
 0x6e5   :  { %v2787_v32 = vpop.eup %2786 }
 0x6e6   :  { %v2198_v48 = vmul.f32 %v2787_v32, %v3644_v59 }
 0x6e8   :  { %2230 = vst [vmem:[#allocation5 + $0xf8] sm:$0xff] %v2198_v48 }
 0x6e9   :  { %2243 = dma.vmem_to_hbm [thread:$0]  %s2236_s14, 4096, %s2238_s17, [#allocation4], %s2846_s18, %s2846_s18, %s2847_s19  }
 0x6ea   :  { %2838 = dma.done.wait [#allocation4], 4096  }
 0x6eb   :  { %2839 = vsyncadd [#allocation4], 4294963200 }
 0x6ec   :  { %2248 = vsyncpa [#allocation3], 1 }
 0x6ed   :  { %2249 = vsyncpa [#allocation4], 1 }

</bundles_post_ra>
